<compile_context>
chip_gen: v7x
topology: tpu7x:2x2x1
jax: 0.10.0
libtpu: 0.0.40
codegen_flags: <defaults>
</compile_context>

<pallas_src>
import math

import jax
import jax.numpy as jnp
import numpy as np
from jax.experimental import pallas as pl
from jax.experimental.pallas import tpu as pltpu

# ----------------------------- hyper-parameters ------------------------------
NUM_FEATURES = 32     # embedding vocabulary size
EMBED_DIM    = 32     # d_model
NUM_HEADS    = 4
NUM_LAYERS   = 2
HIDDEN_DIM   = 64     # dim_feedforward
HEAD_DIM     = EMBED_DIM // NUM_HEADS
LN_EPS       = 1e-5
LANE         = 128    # lane width for the lane-dense QKV matmul / output store

BATCH = 2
SEQ   = 8


def _layer_norm(v, w, b):
    mu = jnp.mean(v, axis=-1, keepdims=True)
    c = v - mu
    var = jnp.mean(c * c, axis=-1, keepdims=True)
    return c * jax.lax.rsqrt(var + LN_EPS) * w + b


# ------------------------- host-side parameter prep ---------------------------
def _prepare_params(params, matmul_dtype):
    (emb, inpw, inpb, outw, outb, ln1w, ln1b, ln2w, ln2b,
     f1w, f1b, f2w, f2b, fcw, fcb) = params
    L, E, D, HID = NUM_LAYERS, EMBED_DIM, HEAD_DIM, HIDDEN_DIM
    scale = 1.0 / math.sqrt(D)

    # Fused QKV weight: torch computes x @ in_proj_weight^T; rows [0:E]=q, [E:2E]=k,
    # [2E:3E]=v.  Fold the 1/sqrt(D) attention scale into the q columns/bias and
    # zero-pad the lane dim to 128 so the in-kernel matmul + bias add are lane-dense.
    wqkv_t = jnp.transpose(inpw, (0, 2, 1))                               # (L, E, 3E)
    qscale = jnp.concatenate([jnp.full((E,), scale, jnp.float32),
                              jnp.ones((2 * E,), jnp.float32)])           # (3E,)
    wqkv_t = wqkv_t * qscale
    wqkv = jnp.zeros((L, E, LANE), jnp.float32).at[:, :, :3 * E].set(wqkv_t)
    bqkv = inpb * qscale                                                  # (L, 3E)

    wo = jnp.transpose(outw, (0, 2, 1))          # (L, E, E)   ctx_flat @ Wo^T layout
    w1 = jnp.transpose(f1w, (0, 2, 1))           # (L, E, HID)
    w2 = jnp.transpose(f2w, (0, 2, 1))           # (L, HID, E)

    # One (L, 8, 128) slab for every per-layer vector (biases + LN params).
    vec = jnp.zeros((L, 8, LANE), jnp.float32)
    vec = vec.at[:, 0, :3 * E].set(bqkv)         # row 0: fused qkv bias (q pre-scaled)
    vec = vec.at[:, 1, :E].set(outb)             # row 1: out_proj bias
    vec = vec.at[:, 2, :E].set(ln1w)             # rows 2..5: LN params
    vec = vec.at[:, 3, :E].set(ln1b)
    vec = vec.at[:, 4, :E].set(ln2w)
    vec = vec.at[:, 5, :E].set(ln2b)
    vec = vec.at[:, 6, :HID].set(f1b)            # row 6: linear1 bias
    vec = vec.at[:, 7, :E].set(f2b)              # row 7: linear2 bias

    # Final fc: weight column tiled across 128 lanes + bias row, one slab.
    fc_slab = jnp.concatenate(
        [jnp.tile(jnp.transpose(fcw), (1, LANE)),                 # (E, LANE)
         jnp.tile(jnp.reshape(fcb, (1, 1)), (1, LANE))], axis=0)  # (E+1, LANE)

    md = matmul_dtype
    return (emb.astype(md), wqkv.astype(md), wo.astype(md),
            w1.astype(md), w2.astype(md), vec, fc_slab)


# -------------------------------- wrapper -------------------------------------
def feature_cross_transformer(x_ids, params, *, tile_b=None,
                              matmul_dtype=jnp.float32,
                              approx_softmax_recip=False,
                              vmem_limit_bytes=None):
    B, S = x_ids.shape
    tile_b = B if tile_b is None else tile_b
    assert B % tile_b == 0
    if tile_b != B:
        # sublane alignment for the (tile_b, LANE) output tile; on v7x also pick
        # tile_b <= B // 2 so the batch grid has >= 2 programs (2 TensorCores).
        assert tile_b % 8 == 0

    H, D, E, HID, F = NUM_HEADS, HEAD_DIM, EMBED_DIM, HIDDEN_DIM, NUM_FEATURES
    bs = tile_b * S

    (emb, wqkv, wo, w1, w2, vec, fc_slab) = _prepare_params(params, matmul_dtype)
    x_flat = x_ids.reshape(B * S, 1).astype(jnp.int32)

    def kernel(x_ref, emb_ref, wqkv_ref, wo_ref, w1_ref, w2_ref, vec_ref, fc_ref,
               out_ref):
        ids = x_ref[...]                                            # (bs, 1) int32
        table = emb_ref[...]                                        # (F, E)
        # Embedding lookup as a one-hot matmul (fine while F ~ 32; switch to a
        # gather / DMA gather if the vocabulary grows).
        onehot = (ids == jax.lax.broadcasted_iota(jnp.int32, (bs, F), 1)
                  ).astype(table.dtype)
        h = jnp.dot(onehot, table, preferred_element_type=jnp.float32)   # (bs, E) f32

        for l in range(NUM_LAYERS):
            vec_l = vec_ref[l]                                      # (8, 128) f32

            # ---- fused QKV: ONE lane-dense (bs,E)x(E,128) matmul + one bias add.
            qkv = jnp.dot(h.astype(matmul_dtype), wqkv_ref[l],
                          preferred_element_type=jnp.float32) + vec_l[0:1, :]  # (bs,128)

            # Heads onto the leading axis (static lane slices, no per-head matmuls)
            # so scores/softmax/PV run as ONE batched dot over n = H*tile_b.
            def heads(base):
                return jnp.concatenate(
                    [qkv[:, base + hd * D: base + (hd + 1) * D].reshape(tile_b, S, D)
                     for hd in range(H)], axis=0)                   # (H*tile_b, S, D)

            qh = heads(0)                 # q already scaled by 1/sqrt(D) host-side
            kh = heads(E)
            vh = heads(2 * E)

            s = jnp.einsum('nqd,nkd->nqk', qh, kh,
                           preferred_element_type=jnp.float32)
            m = jnp.max(s, axis=-1, keepdims=True)
            e = jnp.exp(s - m)
            den = jnp.sum(e, axis=-1, keepdims=True)
            if approx_softmax_recip:
                p = e * pl.reciprocal(den, approx=True)             # EUP slot
            else:
                p = e / den                                         # exact
            ctx = jnp.einsum('nqk,nkd->nqd', p, vh,
                             preferred_element_type=jnp.float32)    # (H*tile_b, S, D)

            # Heads back onto lanes -> ONE K=E out-projection matmul
            # (replaces 4 serial K=8 matmuls).
            ctx_flat = jnp.concatenate(
                [ctx[hd * tile_b:(hd + 1) * tile_b].reshape(bs, D) for hd in range(H)],
                axis=-1)                                            # (bs, E)
            attn = jnp.dot(ctx_flat.astype(matmul_dtype), wo_ref[l],
                           preferred_element_type=jnp.float32) + vec_l[1:2, :E]
            h = _layer_norm(h + attn, vec_l[2:3, :E], vec_l[3:4, :E])

            # ---- feed-forward (ReLU, PyTorch default); dropout = identity.
            ff = jnp.dot(h.astype(matmul_dtype), w1_ref[l],
                         preferred_element_type=jnp.float32) + vec_l[6:7, :HID]
            ff = jnp.maximum(ff, 0.0)
            ff = jnp.dot(ff.astype(matmul_dtype), w2_ref[l],
                         preferred_element_type=jnp.float32) + vec_l[7:8, :E]
            h = _layer_norm(h + ff, vec_l[4:5, :E], vec_l[5:6, :E])

        # Mean pool over S: reshape + sublane reduce (no O(tile_b^2) pool matmul).
        pooled = jnp.mean(h.reshape(tile_b, S, E), axis=1)          # (tile_b, E)
        fcw = fc_ref[0:E, :].astype(matmul_dtype)                   # (E, 128) lane-tiled
        fcb = fc_ref[E:E + 1, :]                                    # (1, 128)
        logits = jnp.dot(pooled.astype(matmul_dtype), fcw,
                         preferred_element_type=jnp.float32) + fcb
        out_ref[...] = jax.nn.sigmoid(logits)                       # lane-dense store

    weights = (emb, wqkv, wo, w1, w2, vec, fc_slab)

    def bcast_spec(a):   # full-array block, broadcast across the batch grid
        return pl.BlockSpec(a.shape, lambda b, nd=a.ndim: (0,) * nd)

    in_specs = [pl.BlockSpec((bs, 1), lambda b: (b, 0))]
    in_specs += [bcast_spec(a) for a in weights]

    out_padded = pl.pallas_call(
        kernel,
        grid=(B // tile_b,),
        in_specs=in_specs,
        out_specs=pl.BlockSpec((tile_b, LANE), lambda b: (b, 0)),
        out_shape=jax.ShapeDtypeStruct((B, LANE), jnp.float32),
        compiler_params=pltpu.CompilerParams(
            dimension_semantics=("parallel",),
            vmem_limit_bytes=vmem_limit_bytes),
    )(x_flat, *weights)
    # logit replicated across the 128 lanes of each row; keep column 0.
    return out_padded[:, :1]


# ------------------------ pure-JAX reference (for checking) -------------------
def reference(x_ids, params):
    (emb, inpw, inpb, outw, outb, ln1w, ln1b, ln2w, ln2b,
     f1w, f1b, f2w, f2b, fcw, fcb) = params
    h = emb[x_ids]                                                  # (B, S, E)

    def layer_norm(v, w, b):
        mu = jnp.mean(v, axis=-1, keepdims=True)
        var = jnp.mean((v - mu) ** 2, axis=-1, keepdims=True)
        return (v - mu) * jax.lax.rsqrt(var + LN_EPS) * w + b

    scale = 1.0 / math.sqrt(HEAD_DIM)
    for l in range(NUM_LAYERS):
        qkv = jnp.einsum('bse,fe->bsf', h, inpw[l]) + inpb[l]
        q, k, v = jnp.split(qkv, 3, axis=-1)
        B, S, _ = q.shape
        qh = q.reshape(B, S, NUM_HEADS, HEAD_DIM).transpose(0, 2, 1, 3)
        kh = k.reshape(B, S, NUM_HEADS, HEAD_DIM).transpose(0, 2, 1, 3)
        vh = v.reshape(B, S, NUM_HEADS, HEAD_DIM).transpose(0, 2, 1, 3)
        sc = jnp.einsum('bhqd,bhkd->bhqk', qh, kh) * scale
        p = jax.nn.softmax(sc, axis=-1)
        a = jnp.einsum('bhqk,bhkd->bhqd', p, vh).transpose(0, 2, 1, 3).reshape(B, S, EMBED_DIM)
        a = jnp.einsum('bse,fe->bsf', a, outw[l]) + outb[l]
        h = layer_norm(h + a, ln1w[l], ln1b[l])
        ff = jnp.maximum(jnp.einsum('bse,he->bsh', h, f1w[l]) + f1b[l], 0.0)
        ff = jnp.einsum('bsh,eh->bse', ff, f2w[l]) + f2b[l]
        h = layer_norm(h + ff, ln2w[l], ln2b[l])
    pooled = jnp.mean(h, axis=1)
    return jax.nn.sigmoid(pooled @ fcw.T + fcb)


# ----------------------------------- main --------------------------------------
if __name__ == "__main__":
    key = jax.random.PRNGKey(0)
    keys = jax.random.split(key, 16)

    def normal(k, shape, scale=0.02):
        return (scale * jax.random.normal(k, shape)).astype(jnp.float32)

    params = (
        normal(keys[0], (NUM_FEATURES, EMBED_DIM)),                 # embedding
        normal(keys[1], (NUM_LAYERS, 3 * EMBED_DIM, EMBED_DIM)),    # in_proj_weight
        normal(keys[2], (NUM_LAYERS, 3 * EMBED_DIM)),               # in_proj_bias
        normal(keys[3], (NUM_LAYERS, EMBED_DIM, EMBED_DIM)),        # out_proj.weight
        normal(keys[4], (NUM_LAYERS, EMBED_DIM)),                   # out_proj.bias
        jnp.ones((NUM_LAYERS, EMBED_DIM), jnp.float32),             # ln1.weight
        jnp.zeros((NUM_LAYERS, EMBED_DIM), jnp.float32),            # ln1.bias
        jnp.ones((NUM_LAYERS, EMBED_DIM), jnp.float32),             # ln2.weight
        jnp.zeros((NUM_LAYERS, EMBED_DIM), jnp.float32),            # ln2.bias
        normal(keys[5], (NUM_LAYERS, HIDDEN_DIM, EMBED_DIM)),       # linear1.weight
        normal(keys[6], (NUM_LAYERS, HIDDEN_DIM)),                  # linear1.bias
        normal(keys[7], (NUM_LAYERS, EMBED_DIM, HIDDEN_DIM)),       # linear2.weight
        normal(keys[8], (NUM_LAYERS, EMBED_DIM)),                   # linear2.bias
        normal(keys[9], (1, EMBED_DIM)),                            # fc.weight
        jnp.zeros((1, 1), jnp.float32),                             # fc.bias
    )

    x = jax.random.randint(keys[10], (BATCH, SEQ), 0, NUM_FEATURES, dtype=jnp.int32)

    ref = jax.block_until_ready(
        reference(x, (params[0], params[1], params[2], params[3], params[4],
                      params[5], params[6], params[7], params[8], params[9],
                      params[10], params[11], params[12], params[13],
                      params[14][:, 0])))

    # f32 matmul-operand path (exact softmax reciprocal) — tight check.
    out_f32 = jax.block_until_ready(feature_cross_transformer(x, params))
    assert out_f32.shape == (BATCH, 1)
    np.testing.assert_allclose(np.asarray(out_f32), np.asarray(ref),
                               rtol=2e-3, atol=1e-3)

    # bf16 MXU-operand path (v6e/v7x-recommended) with approximate softmax
    # reciprocal — looser tolerance per the review's note.
    out_bf16 = jax.block_until_ready(
        feature_cross_transformer(x, params, matmul_dtype=jnp.bfloat16,
                                  approx_softmax_recip=True))
    assert out_bf16.shape == (BATCH, 1)
    np.testing.assert_allclose(np.asarray(out_bf16), np.asarray(ref),
                               rtol=2e-2, atol=1e-2)

    print("KERNEL_OK")
</pallas_src>

<mosaic_0001>
module attributes {stable_mosaic.version = 11 : i64} {
  func.func @kernel(%arg0: i32, %arg1: memref<16x1xi32, #tpu.memory_space<vmem>>, %arg2: memref<32x32xf32, #tpu.memory_space<vmem>>, %arg3: memref<2x32x128xf32, #tpu.memory_space<vmem>>, %arg4: memref<2x32x32xf32, #tpu.memory_space<vmem>>, %arg5: memref<2x32x64xf32, #tpu.memory_space<vmem>>, %arg6: memref<2x64x32xf32, #tpu.memory_space<vmem>>, %arg7: memref<2x8x128xf32, #tpu.memory_space<vmem>>, %arg8: memref<33x128xf32, #tpu.memory_space<vmem>>, %arg9: memref<2x128xf32, #tpu.memory_space<vmem>>) attributes {dimension_semantics = [#tpu.dimension_semantics<parallel>], iteration_bounds = array<i64: 1>, scalar_prefetch = 0 : i64, scratch_operands = 0 : i64, tpu.core_type = #tpu.core_type<tc>, window_params = [{transform_indices = @transform_0, window_bounds = array<i64: 16, 1>}, {pipeline_mode = #tpu.pipeline_mode<synchronous>, transform_indices = @transform_1, window_bounds = array<i64: 32, 32>}, {pipeline_mode = #tpu.pipeline_mode<synchronous>, transform_indices = @transform_2, window_bounds = array<i64: 2, 32, 128>}, {pipeline_mode = #tpu.pipeline_mode<synchronous>, transform_indices = @transform_3, window_bounds = array<i64: 2, 32, 32>}, {pipeline_mode = #tpu.pipeline_mode<synchronous>, transform_indices = @transform_4, window_bounds = array<i64: 2, 32, 64>}, {pipeline_mode = #tpu.pipeline_mode<synchronous>, transform_indices = @transform_5, window_bounds = array<i64: 2, 64, 32>}, {pipeline_mode = #tpu.pipeline_mode<synchronous>, transform_indices = @transform_6, window_bounds = array<i64: 2, 8, 128>}, {pipeline_mode = #tpu.pipeline_mode<synchronous>, transform_indices = @transform_7, window_bounds = array<i64: 33, 128>}, {transform_indices = @transform_8, window_bounds = array<i64: 2, 128>}]} {
    %c0 = arith.constant 0 : index
    %c0_0 = arith.constant 0 : index
    %0 = vector.load %arg1[%c0, %c0_0] : memref<16x1xi32, #tpu.memory_space<vmem>>, vector<16x1xi32>
    %c0_1 = arith.constant 0 : index
    %c0_2 = arith.constant 0 : index
    %1 = vector.load %arg2[%c0_1, %c0_2] : memref<32x32xf32, #tpu.memory_space<vmem>>, vector<32x32xf32>
    %2 = tpu.iota {dimensions = array<i32: 1>} : vector<16x32xi32>
    %3 = vector.broadcast %0 : vector<16x1xi32> to vector<16x32xi32>
    %4 = arith.cmpi eq, %3, %2 : vector<16x32xi32>
    %5 = arith.extui %4 : vector<16x32xi1> to vector<16x32xi32>
    %6 = arith.sitofp %5 : vector<16x32xi32> to vector<16x32xf32>
    %cst = arith.constant dense<0.000000e+00> : vector<16x32xf32>
    %7 = tpu.matmul %6, %1, %cst {dimension_numbers = #tpu.dot_dimension_numbers<[1], [0], [0], [1], [0, 0, 1, 1], [], []>} : vector<16x32xf32>, vector<32x32xf32>, vector<16x32xf32> -> vector<16x32xf32>
    %c0_3 = arith.constant 0 : index
    %c0_4 = arith.constant 0 : index
    %c0_5 = arith.constant 0 : index
    %8 = vector.load %arg7[%c0_3, %c0_4, %c0_5] : memref<2x8x128xf32, #tpu.memory_space<vmem>>, vector<1x8x128xf32>
    %9 = vector.shape_cast %8 : vector<1x8x128xf32> to vector<8x128xf32>
    %c0_6 = arith.constant 0 : index
    %c0_7 = arith.constant 0 : index
    %c0_8 = arith.constant 0 : index
    %10 = vector.load %arg3[%c0_6, %c0_7, %c0_8] : memref<2x32x128xf32, #tpu.memory_space<vmem>>, vector<1x32x128xf32>
    %11 = vector.shape_cast %10 : vector<1x32x128xf32> to vector<32x128xf32>
    %cst_9 = arith.constant dense<0.000000e+00> : vector<16x128xf32>
    %12 = tpu.matmul %7, %11, %cst_9 {dimension_numbers = #tpu.dot_dimension_numbers<[1], [0], [0], [1], [0, 0, 1, 1], [], []>} : vector<16x32xf32>, vector<32x128xf32>, vector<16x128xf32> -> vector<16x128xf32>
    %13 = vector.extract_strided_slice %9 {offsets = [0, 0], sizes = [1, 128], strides = [1, 1]} : vector<8x128xf32> to vector<1x128xf32>
    %14 = vector.broadcast %13 : vector<1x128xf32> to vector<16x128xf32>
    %15 = arith.addf %12, %14 : vector<16x128xf32>
    %16 = vector.extract_strided_slice %15 {offsets = [0, 0], sizes = [16, 8], strides = [1, 1]} : vector<16x128xf32> to vector<16x8xf32>
    %17 = vector.shape_cast %16 : vector<16x8xf32> to vector<2x8x8xf32>
    %18 = vector.extract_strided_slice %15 {offsets = [0, 8], sizes = [16, 8], strides = [1, 1]} : vector<16x128xf32> to vector<16x8xf32>
    %19 = vector.shape_cast %18 : vector<16x8xf32> to vector<2x8x8xf32>
    %20 = vector.extract_strided_slice %15 {offsets = [0, 16], sizes = [16, 8], strides = [1, 1]} : vector<16x128xf32> to vector<16x8xf32>
    %21 = vector.shape_cast %20 : vector<16x8xf32> to vector<2x8x8xf32>
    %22 = vector.extract_strided_slice %15 {offsets = [0, 24], sizes = [16, 8], strides = [1, 1]} : vector<16x128xf32> to vector<16x8xf32>
    %23 = vector.shape_cast %22 : vector<16x8xf32> to vector<2x8x8xf32>
    %24 = tpu.concatenate %17, %19, %21, %23 in 0 : vector<2x8x8xf32>, vector<2x8x8xf32>, vector<2x8x8xf32>, vector<2x8x8xf32> -> vector<8x8x8xf32>
    %25 = vector.extract_strided_slice %15 {offsets = [0, 32], sizes = [16, 8], strides = [1, 1]} : vector<16x128xf32> to vector<16x8xf32>
    %26 = vector.shape_cast %25 : vector<16x8xf32> to vector<2x8x8xf32>
    %27 = vector.extract_strided_slice %15 {offsets = [0, 40], sizes = [16, 8], strides = [1, 1]} : vector<16x128xf32> to vector<16x8xf32>
    %28 = vector.shape_cast %27 : vector<16x8xf32> to vector<2x8x8xf32>
    %29 = vector.extract_strided_slice %15 {offsets = [0, 48], sizes = [16, 8], strides = [1, 1]} : vector<16x128xf32> to vector<16x8xf32>
    %30 = vector.shape_cast %29 : vector<16x8xf32> to vector<2x8x8xf32>
    %31 = vector.extract_strided_slice %15 {offsets = [0, 56], sizes = [16, 8], strides = [1, 1]} : vector<16x128xf32> to vector<16x8xf32>
    %32 = vector.shape_cast %31 : vector<16x8xf32> to vector<2x8x8xf32>
    %33 = tpu.concatenate %26, %28, %30, %32 in 0 : vector<2x8x8xf32>, vector<2x8x8xf32>, vector<2x8x8xf32>, vector<2x8x8xf32> -> vector<8x8x8xf32>
    %34 = vector.extract_strided_slice %15 {offsets = [0, 64], sizes = [16, 8], strides = [1, 1]} : vector<16x128xf32> to vector<16x8xf32>
    %35 = vector.shape_cast %34 : vector<16x8xf32> to vector<2x8x8xf32>
    %36 = vector.extract_strided_slice %15 {offsets = [0, 72], sizes = [16, 8], strides = [1, 1]} : vector<16x128xf32> to vector<16x8xf32>
    %37 = vector.shape_cast %36 : vector<16x8xf32> to vector<2x8x8xf32>
    %38 = vector.extract_strided_slice %15 {offsets = [0, 80], sizes = [16, 8], strides = [1, 1]} : vector<16x128xf32> to vector<16x8xf32>
    %39 = vector.shape_cast %38 : vector<16x8xf32> to vector<2x8x8xf32>
    %40 = vector.extract_strided_slice %15 {offsets = [0, 88], sizes = [16, 8], strides = [1, 1]} : vector<16x128xf32> to vector<16x8xf32>
    %41 = vector.shape_cast %40 : vector<16x8xf32> to vector<2x8x8xf32>
    %42 = tpu.concatenate %35, %37, %39, %41 in 0 : vector<2x8x8xf32>, vector<2x8x8xf32>, vector<2x8x8xf32>, vector<2x8x8xf32> -> vector<8x8x8xf32>
    "tpu.trace_start"() <{level = 10 : i32, message = "nqd,nkd->nqk"}> : () -> ()
    %cst_10 = arith.constant dense<0.000000e+00> : vector<8x8x8xf32>
    %43 = tpu.matmul %24, %33, %cst_10 {dimension_numbers = #tpu.dot_dimension_numbers<[2], [2], [1], [1], [0, 0, 0, 1, 1, 1], [0], [0]>} : vector<8x8x8xf32>, vector<8x8x8xf32>, vector<8x8x8xf32> -> vector<8x8x8xf32>
    "tpu.trace_stop"() : () -> ()
    %cst_11 = arith.constant dense<0xFF800000> : vector<8x8xf32>
    %44 = vector.multi_reduction <maximumf>, %43, %cst_11 [2] : vector<8x8x8xf32> to vector<8x8xf32>
    %45 = vector.shape_cast %44 : vector<8x8xf32> to vector<8x8x1xf32>
    %46 = vector.broadcast %45 : vector<8x8x1xf32> to vector<8x8x8xf32>
    %47 = arith.subf %43, %46 : vector<8x8x8xf32>
    %48 = math.exp %47 : vector<8x8x8xf32>
    %cst_12 = arith.constant dense<0.000000e+00> : vector<8x8xf32>
    %49 = vector.multi_reduction <add>, %48, %cst_12 [2] : vector<8x8x8xf32> to vector<8x8xf32>
    %50 = vector.shape_cast %49 : vector<8x8xf32> to vector<8x8x1xf32>
    %51 = vector.broadcast %50 : vector<8x8x1xf32> to vector<8x8x8xf32>
    %52 = arith.divf %48, %51 : vector<8x8x8xf32>
    "tpu.trace_start"() <{level = 10 : i32, message = "nqk,nkd->nqd"}> : () -> ()
    %cst_13 = arith.constant dense<0.000000e+00> : vector<8x8x8xf32>
    %53 = tpu.matmul %52, %42, %cst_13 {dimension_numbers = #tpu.dot_dimension_numbers<[2], [1], [1], [2], [0, 0, 0, 1, 1, 2], [0], [0]>} : vector<8x8x8xf32>, vector<8x8x8xf32>, vector<8x8x8xf32> -> vector<8x8x8xf32>
    "tpu.trace_stop"() : () -> ()
    %54 = vector.extract_strided_slice %53 {offsets = [0, 0, 0], sizes = [2, 8, 8], strides = [1, 1, 1]} : vector<8x8x8xf32> to vector<2x8x8xf32>
    %55 = vector.shape_cast %54 : vector<2x8x8xf32> to vector<16x8xf32>
    %56 = vector.extract_strided_slice %53 {offsets = [2, 0, 0], sizes = [2, 8, 8], strides = [1, 1, 1]} : vector<8x8x8xf32> to vector<2x8x8xf32>
    %57 = vector.shape_cast %56 : vector<2x8x8xf32> to vector<16x8xf32>
    %58 = vector.extract_strided_slice %53 {offsets = [4, 0, 0], sizes = [2, 8, 8], strides = [1, 1, 1]} : vector<8x8x8xf32> to vector<2x8x8xf32>
    %59 = vector.shape_cast %58 : vector<2x8x8xf32> to vector<16x8xf32>
    %60 = vector.extract_strided_slice %53 {offsets = [6, 0, 0], sizes = [2, 8, 8], strides = [1, 1, 1]} : vector<8x8x8xf32> to vector<2x8x8xf32>
    %61 = vector.shape_cast %60 : vector<2x8x8xf32> to vector<16x8xf32>
    %62 = tpu.concatenate %55, %57, %59, %61 in 1 : vector<16x8xf32>, vector<16x8xf32>, vector<16x8xf32>, vector<16x8xf32> -> vector<16x32xf32>
    %c0_14 = arith.constant 0 : index
    %c0_15 = arith.constant 0 : index
    %c0_16 = arith.constant 0 : index
    %63 = vector.load %arg4[%c0_14, %c0_15, %c0_16] : memref<2x32x32xf32, #tpu.memory_space<vmem>>, vector<1x32x32xf32>
    %64 = vector.shape_cast %63 : vector<1x32x32xf32> to vector<32x32xf32>
    %cst_17 = arith.constant dense<0.000000e+00> : vector<16x32xf32>
    %65 = tpu.matmul %62, %64, %cst_17 {dimension_numbers = #tpu.dot_dimension_numbers<[1], [0], [0], [1], [0, 0, 1, 1], [], []>} : vector<16x32xf32>, vector<32x32xf32>, vector<16x32xf32> -> vector<16x32xf32>
    %66 = vector.extract_strided_slice %9 {offsets = [1, 0], sizes = [1, 32], strides = [1, 1]} : vector<8x128xf32> to vector<1x32xf32>
    %67 = vector.broadcast %66 : vector<1x32xf32> to vector<16x32xf32>
    %68 = arith.addf %65, %67 : vector<16x32xf32>
    %69 = arith.addf %7, %68 : vector<16x32xf32>
    %70 = vector.extract_strided_slice %9 {offsets = [2, 0], sizes = [1, 32], strides = [1, 1]} : vector<8x128xf32> to vector<1x32xf32>
    %71 = vector.extract_strided_slice %9 {offsets = [3, 0], sizes = [1, 32], strides = [1, 1]} : vector<8x128xf32> to vector<1x32xf32>
    %cst_18 = arith.constant dense<0.000000e+00> : vector<16xf32>
    %72 = vector.multi_reduction <add>, %69, %cst_18 [1] : vector<16x32xf32> to vector<16xf32>
    %73 = vector.shape_cast %72 : vector<16xf32> to vector<16x1xf32>
    %cst_19 = arith.constant 3.200000e+01 : f32
    %74 = vector.broadcast %cst_19 : f32 to vector<16x1xf32>
    %75 = arith.divf %73, %74 : vector<16x1xf32>
    %76 = vector.broadcast %75 : vector<16x1xf32> to vector<16x32xf32>
    %77 = arith.subf %69, %76 : vector<16x32xf32>
    %78 = arith.mulf %77, %77 : vector<16x32xf32>
    %cst_20 = arith.constant dense<0.000000e+00> : vector<16xf32>
    %79 = vector.multi_reduction <add>, %78, %cst_20 [1] : vector<16x32xf32> to vector<16xf32>
    %80 = vector.shape_cast %79 : vector<16xf32> to vector<16x1xf32>
    %cst_21 = arith.constant 3.200000e+01 : f32
    %81 = vector.broadcast %cst_21 : f32 to vector<16x1xf32>
    %82 = arith.divf %80, %81 : vector<16x1xf32>
    %cst_22 = arith.constant 9.99999974E-6 : f32
    %83 = vector.broadcast %cst_22 : f32 to vector<16x1xf32>
    %84 = arith.addf %82, %83 : vector<16x1xf32>
    %85 = math.rsqrt %84 : vector<16x1xf32>
    %86 = vector.broadcast %85 : vector<16x1xf32> to vector<16x32xf32>
    %87 = arith.mulf %77, %86 : vector<16x32xf32>
    %88 = vector.broadcast %70 : vector<1x32xf32> to vector<16x32xf32>
    %89 = arith.mulf %87, %88 : vector<16x32xf32>
    %90 = vector.broadcast %71 : vector<1x32xf32> to vector<16x32xf32>
    %91 = arith.addf %89, %90 : vector<16x32xf32>
    %c0_23 = arith.constant 0 : index
    %c0_24 = arith.constant 0 : index
    %c0_25 = arith.constant 0 : index
    %92 = vector.load %arg5[%c0_23, %c0_24, %c0_25] : memref<2x32x64xf32, #tpu.memory_space<vmem>>, vector<1x32x64xf32>
    %93 = vector.shape_cast %92 : vector<1x32x64xf32> to vector<32x64xf32>
    %cst_26 = arith.constant dense<0.000000e+00> : vector<16x64xf32>
    %94 = tpu.matmul %91, %93, %cst_26 {dimension_numbers = #tpu.dot_dimension_numbers<[1], [0], [0], [1], [0, 0, 1, 1], [], []>} : vector<16x32xf32>, vector<32x64xf32>, vector<16x64xf32> -> vector<16x64xf32>
    %95 = vector.extract_strided_slice %9 {offsets = [6, 0], sizes = [1, 64], strides = [1, 1]} : vector<8x128xf32> to vector<1x64xf32>
    %96 = vector.broadcast %95 : vector<1x64xf32> to vector<16x64xf32>
    %97 = arith.addf %94, %96 : vector<16x64xf32>
    %cst_27 = arith.constant 0.000000e+00 : f32
    %98 = vector.broadcast %cst_27 : f32 to vector<16x64xf32>
    %99 = arith.maximumf %97, %98 : vector<16x64xf32>
    %c0_28 = arith.constant 0 : index
    %c0_29 = arith.constant 0 : index
    %c0_30 = arith.constant 0 : index
    %100 = vector.load %arg6[%c0_28, %c0_29, %c0_30] : memref<2x64x32xf32, #tpu.memory_space<vmem>>, vector<1x64x32xf32>
    %101 = vector.shape_cast %100 : vector<1x64x32xf32> to vector<64x32xf32>
    %cst_31 = arith.constant dense<0.000000e+00> : vector<16x32xf32>
    %102 = tpu.matmul %99, %101, %cst_31 {dimension_numbers = #tpu.dot_dimension_numbers<[1], [0], [0], [1], [0, 0, 1, 1], [], []>} : vector<16x64xf32>, vector<64x32xf32>, vector<16x32xf32> -> vector<16x32xf32>
    %103 = vector.extract_strided_slice %9 {offsets = [7, 0], sizes = [1, 32], strides = [1, 1]} : vector<8x128xf32> to vector<1x32xf32>
    %104 = vector.broadcast %103 : vector<1x32xf32> to vector<16x32xf32>
    %105 = arith.addf %102, %104 : vector<16x32xf32>
    %106 = arith.addf %91, %105 : vector<16x32xf32>
    %107 = vector.extract_strided_slice %9 {offsets = [4, 0], sizes = [1, 32], strides = [1, 1]} : vector<8x128xf32> to vector<1x32xf32>
    %108 = vector.extract_strided_slice %9 {offsets = [5, 0], sizes = [1, 32], strides = [1, 1]} : vector<8x128xf32> to vector<1x32xf32>
    %cst_32 = arith.constant dense<0.000000e+00> : vector<16xf32>
    %109 = vector.multi_reduction <add>, %106, %cst_32 [1] : vector<16x32xf32> to vector<16xf32>
    %110 = vector.shape_cast %109 : vector<16xf32> to vector<16x1xf32>
    %cst_33 = arith.constant 3.200000e+01 : f32
    %111 = vector.broadcast %cst_33 : f32 to vector<16x1xf32>
    %112 = arith.divf %110, %111 : vector<16x1xf32>
    %113 = vector.broadcast %112 : vector<16x1xf32> to vector<16x32xf32>
    %114 = arith.subf %106, %113 : vector<16x32xf32>
    %115 = arith.mulf %114, %114 : vector<16x32xf32>
    %cst_34 = arith.constant dense<0.000000e+00> : vector<16xf32>
    %116 = vector.multi_reduction <add>, %115, %cst_34 [1] : vector<16x32xf32> to vector<16xf32>
    %117 = vector.shape_cast %116 : vector<16xf32> to vector<16x1xf32>
    %cst_35 = arith.constant 3.200000e+01 : f32
    %118 = vector.broadcast %cst_35 : f32 to vector<16x1xf32>
    %119 = arith.divf %117, %118 : vector<16x1xf32>
    %cst_36 = arith.constant 9.99999974E-6 : f32
    %120 = vector.broadcast %cst_36 : f32 to vector<16x1xf32>
    %121 = arith.addf %119, %120 : vector<16x1xf32>
    %122 = math.rsqrt %121 : vector<16x1xf32>
    %123 = vector.broadcast %122 : vector<16x1xf32> to vector<16x32xf32>
    %124 = arith.mulf %114, %123 : vector<16x32xf32>
    %125 = vector.broadcast %107 : vector<1x32xf32> to vector<16x32xf32>
    %126 = arith.mulf %124, %125 : vector<16x32xf32>
    %127 = vector.broadcast %108 : vector<1x32xf32> to vector<16x32xf32>
    %128 = arith.addf %126, %127 : vector<16x32xf32>
    %c1 = arith.constant 1 : index
    %c0_37 = arith.constant 0 : index
    %c0_38 = arith.constant 0 : index
    %129 = vector.load %arg7[%c1, %c0_37, %c0_38] : memref<2x8x128xf32, #tpu.memory_space<vmem>>, vector<1x8x128xf32>
    %130 = vector.shape_cast %129 : vector<1x8x128xf32> to vector<8x128xf32>
    %c1_39 = arith.constant 1 : index
    %c0_40 = arith.constant 0 : index
    %c0_41 = arith.constant 0 : index
    %131 = vector.load %arg3[%c1_39, %c0_40, %c0_41] : memref<2x32x128xf32, #tpu.memory_space<vmem>>, vector<1x32x128xf32>
    %132 = vector.shape_cast %131 : vector<1x32x128xf32> to vector<32x128xf32>
    %cst_42 = arith.constant dense<0.000000e+00> : vector<16x128xf32>
    %133 = tpu.matmul %128, %132, %cst_42 {dimension_numbers = #tpu.dot_dimension_numbers<[1], [0], [0], [1], [0, 0, 1, 1], [], []>} : vector<16x32xf32>, vector<32x128xf32>, vector<16x128xf32> -> vector<16x128xf32>
    %134 = vector.extract_strided_slice %130 {offsets = [0, 0], sizes = [1, 128], strides = [1, 1]} : vector<8x128xf32> to vector<1x128xf32>
    %135 = vector.broadcast %134 : vector<1x128xf32> to vector<16x128xf32>
    %136 = arith.addf %133, %135 : vector<16x128xf32>
    %137 = vector.extract_strided_slice %136 {offsets = [0, 0], sizes = [16, 8], strides = [1, 1]} : vector<16x128xf32> to vector<16x8xf32>
    %138 = vector.shape_cast %137 : vector<16x8xf32> to vector<2x8x8xf32>
    %139 = vector.extract_strided_slice %136 {offsets = [0, 8], sizes = [16, 8], strides = [1, 1]} : vector<16x128xf32> to vector<16x8xf32>
    %140 = vector.shape_cast %139 : vector<16x8xf32> to vector<2x8x8xf32>
    %141 = vector.extract_strided_slice %136 {offsets = [0, 16], sizes = [16, 8], strides = [1, 1]} : vector<16x128xf32> to vector<16x8xf32>
    %142 = vector.shape_cast %141 : vector<16x8xf32> to vector<2x8x8xf32>
    %143 = vector.extract_strided_slice %136 {offsets = [0, 24], sizes = [16, 8], strides = [1, 1]} : vector<16x128xf32> to vector<16x8xf32>
    %144 = vector.shape_cast %143 : vector<16x8xf32> to vector<2x8x8xf32>
    %145 = tpu.concatenate %138, %140, %142, %144 in 0 : vector<2x8x8xf32>, vector<2x8x8xf32>, vector<2x8x8xf32>, vector<2x8x8xf32> -> vector<8x8x8xf32>
    %146 = vector.extract_strided_slice %136 {offsets = [0, 32], sizes = [16, 8], strides = [1, 1]} : vector<16x128xf32> to vector<16x8xf32>
    %147 = vector.shape_cast %146 : vector<16x8xf32> to vector<2x8x8xf32>
    %148 = vector.extract_strided_slice %136 {offsets = [0, 40], sizes = [16, 8], strides = [1, 1]} : vector<16x128xf32> to vector<16x8xf32>
    %149 = vector.shape_cast %148 : vector<16x8xf32> to vector<2x8x8xf32>
    %150 = vector.extract_strided_slice %136 {offsets = [0, 48], sizes = [16, 8], strides = [1, 1]} : vector<16x128xf32> to vector<16x8xf32>
    %151 = vector.shape_cast %150 : vector<16x8xf32> to vector<2x8x8xf32>
    %152 = vector.extract_strided_slice %136 {offsets = [0, 56], sizes = [16, 8], strides = [1, 1]} : vector<16x128xf32> to vector<16x8xf32>
    %153 = vector.shape_cast %152 : vector<16x8xf32> to vector<2x8x8xf32>
    %154 = tpu.concatenate %147, %149, %151, %153 in 0 : vector<2x8x8xf32>, vector<2x8x8xf32>, vector<2x8x8xf32>, vector<2x8x8xf32> -> vector<8x8x8xf32>
    %155 = vector.extract_strided_slice %136 {offsets = [0, 64], sizes = [16, 8], strides = [1, 1]} : vector<16x128xf32> to vector<16x8xf32>
    %156 = vector.shape_cast %155 : vector<16x8xf32> to vector<2x8x8xf32>
    %157 = vector.extract_strided_slice %136 {offsets = [0, 72], sizes = [16, 8], strides = [1, 1]} : vector<16x128xf32> to vector<16x8xf32>
    %158 = vector.shape_cast %157 : vector<16x8xf32> to vector<2x8x8xf32>
    %159 = vector.extract_strided_slice %136 {offsets = [0, 80], sizes = [16, 8], strides = [1, 1]} : vector<16x128xf32> to vector<16x8xf32>
    %160 = vector.shape_cast %159 : vector<16x8xf32> to vector<2x8x8xf32>
    %161 = vector.extract_strided_slice %136 {offsets = [0, 88], sizes = [16, 8], strides = [1, 1]} : vector<16x128xf32> to vector<16x8xf32>
    %162 = vector.shape_cast %161 : vector<16x8xf32> to vector<2x8x8xf32>
    %163 = tpu.concatenate %156, %158, %160, %162 in 0 : vector<2x8x8xf32>, vector<2x8x8xf32>, vector<2x8x8xf32>, vector<2x8x8xf32> -> vector<8x8x8xf32>
    "tpu.trace_start"() <{level = 10 : i32, message = "nqd,nkd->nqk"}> : () -> ()
    %cst_43 = arith.constant dense<0.000000e+00> : vector<8x8x8xf32>
    %164 = tpu.matmul %145, %154, %cst_43 {dimension_numbers = #tpu.dot_dimension_numbers<[2], [2], [1], [1], [0, 0, 0, 1, 1, 1], [0], [0]>} : vector<8x8x8xf32>, vector<8x8x8xf32>, vector<8x8x8xf32> -> vector<8x8x8xf32>
    "tpu.trace_stop"() : () -> ()
    %cst_44 = arith.constant dense<0xFF800000> : vector<8x8xf32>
    %165 = vector.multi_reduction <maximumf>, %164, %cst_44 [2] : vector<8x8x8xf32> to vector<8x8xf32>
    %166 = vector.shape_cast %165 : vector<8x8xf32> to vector<8x8x1xf32>
    %167 = vector.broadcast %166 : vector<8x8x1xf32> to vector<8x8x8xf32>
    %168 = arith.subf %164, %167 : vector<8x8x8xf32>
    %169 = math.exp %168 : vector<8x8x8xf32>
    %cst_45 = arith.constant dense<0.000000e+00> : vector<8x8xf32>
    %170 = vector.multi_reduction <add>, %169, %cst_45 [2] : vector<8x8x8xf32> to vector<8x8xf32>
    %171 = vector.shape_cast %170 : vector<8x8xf32> to vector<8x8x1xf32>
    %172 = vector.broadcast %171 : vector<8x8x1xf32> to vector<8x8x8xf32>
    %173 = arith.divf %169, %172 : vector<8x8x8xf32>
    "tpu.trace_start"() <{level = 10 : i32, message = "nqk,nkd->nqd"}> : () -> ()
    %cst_46 = arith.constant dense<0.000000e+00> : vector<8x8x8xf32>
    %174 = tpu.matmul %173, %163, %cst_46 {dimension_numbers = #tpu.dot_dimension_numbers<[2], [1], [1], [2], [0, 0, 0, 1, 1, 2], [0], [0]>} : vector<8x8x8xf32>, vector<8x8x8xf32>, vector<8x8x8xf32> -> vector<8x8x8xf32>
    "tpu.trace_stop"() : () -> ()
    %175 = vector.extract_strided_slice %174 {offsets = [0, 0, 0], sizes = [2, 8, 8], strides = [1, 1, 1]} : vector<8x8x8xf32> to vector<2x8x8xf32>
    %176 = vector.shape_cast %175 : vector<2x8x8xf32> to vector<16x8xf32>
    %177 = vector.extract_strided_slice %174 {offsets = [2, 0, 0], sizes = [2, 8, 8], strides = [1, 1, 1]} : vector<8x8x8xf32> to vector<2x8x8xf32>
    %178 = vector.shape_cast %177 : vector<2x8x8xf32> to vector<16x8xf32>
    %179 = vector.extract_strided_slice %174 {offsets = [4, 0, 0], sizes = [2, 8, 8], strides = [1, 1, 1]} : vector<8x8x8xf32> to vector<2x8x8xf32>
    %180 = vector.shape_cast %179 : vector<2x8x8xf32> to vector<16x8xf32>
    %181 = vector.extract_strided_slice %174 {offsets = [6, 0, 0], sizes = [2, 8, 8], strides = [1, 1, 1]} : vector<8x8x8xf32> to vector<2x8x8xf32>
    %182 = vector.shape_cast %181 : vector<2x8x8xf32> to vector<16x8xf32>
    %183 = tpu.concatenate %176, %178, %180, %182 in 1 : vector<16x8xf32>, vector<16x8xf32>, vector<16x8xf32>, vector<16x8xf32> -> vector<16x32xf32>
    %c1_47 = arith.constant 1 : index
    %c0_48 = arith.constant 0 : index
    %c0_49 = arith.constant 0 : index
    %184 = vector.load %arg4[%c1_47, %c0_48, %c0_49] : memref<2x32x32xf32, #tpu.memory_space<vmem>>, vector<1x32x32xf32>
    %185 = vector.shape_cast %184 : vector<1x32x32xf32> to vector<32x32xf32>
    %cst_50 = arith.constant dense<0.000000e+00> : vector<16x32xf32>
    %186 = tpu.matmul %183, %185, %cst_50 {dimension_numbers = #tpu.dot_dimension_numbers<[1], [0], [0], [1], [0, 0, 1, 1], [], []>} : vector<16x32xf32>, vector<32x32xf32>, vector<16x32xf32> -> vector<16x32xf32>
    %187 = vector.extract_strided_slice %130 {offsets = [1, 0], sizes = [1, 32], strides = [1, 1]} : vector<8x128xf32> to vector<1x32xf32>
    %188 = vector.broadcast %187 : vector<1x32xf32> to vector<16x32xf32>
    %189 = arith.addf %186, %188 : vector<16x32xf32>
    %190 = arith.addf %128, %189 : vector<16x32xf32>
    %191 = vector.extract_strided_slice %130 {offsets = [2, 0], sizes = [1, 32], strides = [1, 1]} : vector<8x128xf32> to vector<1x32xf32>
    %192 = vector.extract_strided_slice %130 {offsets = [3, 0], sizes = [1, 32], strides = [1, 1]} : vector<8x128xf32> to vector<1x32xf32>
    %cst_51 = arith.constant dense<0.000000e+00> : vector<16xf32>
    %193 = vector.multi_reduction <add>, %190, %cst_51 [1] : vector<16x32xf32> to vector<16xf32>
    %194 = vector.shape_cast %193 : vector<16xf32> to vector<16x1xf32>
    %cst_52 = arith.constant 3.200000e+01 : f32
    %195 = vector.broadcast %cst_52 : f32 to vector<16x1xf32>
    %196 = arith.divf %194, %195 : vector<16x1xf32>
    %197 = vector.broadcast %196 : vector<16x1xf32> to vector<16x32xf32>
    %198 = arith.subf %190, %197 : vector<16x32xf32>
    %199 = arith.mulf %198, %198 : vector<16x32xf32>
    %cst_53 = arith.constant dense<0.000000e+00> : vector<16xf32>
    %200 = vector.multi_reduction <add>, %199, %cst_53 [1] : vector<16x32xf32> to vector<16xf32>
    %201 = vector.shape_cast %200 : vector<16xf32> to vector<16x1xf32>
    %cst_54 = arith.constant 3.200000e+01 : f32
    %202 = vector.broadcast %cst_54 : f32 to vector<16x1xf32>
    %203 = arith.divf %201, %202 : vector<16x1xf32>
    %cst_55 = arith.constant 9.99999974E-6 : f32
    %204 = vector.broadcast %cst_55 : f32 to vector<16x1xf32>
    %205 = arith.addf %203, %204 : vector<16x1xf32>
    %206 = math.rsqrt %205 : vector<16x1xf32>
    %207 = vector.broadcast %206 : vector<16x1xf32> to vector<16x32xf32>
    %208 = arith.mulf %198, %207 : vector<16x32xf32>
    %209 = vector.broadcast %191 : vector<1x32xf32> to vector<16x32xf32>
    %210 = arith.mulf %208, %209 : vector<16x32xf32>
    %211 = vector.broadcast %192 : vector<1x32xf32> to vector<16x32xf32>
    %212 = arith.addf %210, %211 : vector<16x32xf32>
    %c1_56 = arith.constant 1 : index
    %c0_57 = arith.constant 0 : index
    %c0_58 = arith.constant 0 : index
    %213 = vector.load %arg5[%c1_56, %c0_57, %c0_58] : memref<2x32x64xf32, #tpu.memory_space<vmem>>, vector<1x32x64xf32>
    %214 = vector.shape_cast %213 : vector<1x32x64xf32> to vector<32x64xf32>
    %cst_59 = arith.constant dense<0.000000e+00> : vector<16x64xf32>
    %215 = tpu.matmul %212, %214, %cst_59 {dimension_numbers = #tpu.dot_dimension_numbers<[1], [0], [0], [1], [0, 0, 1, 1], [], []>} : vector<16x32xf32>, vector<32x64xf32>, vector<16x64xf32> -> vector<16x64xf32>
    %216 = vector.extract_strided_slice %130 {offsets = [6, 0], sizes = [1, 64], strides = [1, 1]} : vector<8x128xf32> to vector<1x64xf32>
    %217 = vector.broadcast %216 : vector<1x64xf32> to vector<16x64xf32>
    %218 = arith.addf %215, %217 : vector<16x64xf32>
    %cst_60 = arith.constant 0.000000e+00 : f32
    %219 = vector.broadcast %cst_60 : f32 to vector<16x64xf32>
    %220 = arith.maximumf %218, %219 : vector<16x64xf32>
    %c1_61 = arith.constant 1 : index
    %c0_62 = arith.constant 0 : index
    %c0_63 = arith.constant 0 : index
    %221 = vector.load %arg6[%c1_61, %c0_62, %c0_63] : memref<2x64x32xf32, #tpu.memory_space<vmem>>, vector<1x64x32xf32>
    %222 = vector.shape_cast %221 : vector<1x64x32xf32> to vector<64x32xf32>
    %cst_64 = arith.constant dense<0.000000e+00> : vector<16x32xf32>
    %223 = tpu.matmul %220, %222, %cst_64 {dimension_numbers = #tpu.dot_dimension_numbers<[1], [0], [0], [1], [0, 0, 1, 1], [], []>} : vector<16x64xf32>, vector<64x32xf32>, vector<16x32xf32> -> vector<16x32xf32>
    %224 = vector.extract_strided_slice %130 {offsets = [7, 0], sizes = [1, 32], strides = [1, 1]} : vector<8x128xf32> to vector<1x32xf32>
    %225 = vector.broadcast %224 : vector<1x32xf32> to vector<16x32xf32>
    %226 = arith.addf %223, %225 : vector<16x32xf32>
    %227 = arith.addf %212, %226 : vector<16x32xf32>
    %228 = vector.extract_strided_slice %130 {offsets = [4, 0], sizes = [1, 32], strides = [1, 1]} : vector<8x128xf32> to vector<1x32xf32>
    %229 = vector.extract_strided_slice %130 {offsets = [5, 0], sizes = [1, 32], strides = [1, 1]} : vector<8x128xf32> to vector<1x32xf32>
    %cst_65 = arith.constant dense<0.000000e+00> : vector<16xf32>
    %230 = vector.multi_reduction <add>, %227, %cst_65 [1] : vector<16x32xf32> to vector<16xf32>
    %231 = vector.shape_cast %230 : vector<16xf32> to vector<16x1xf32>
    %cst_66 = arith.constant 3.200000e+01 : f32
    %232 = vector.broadcast %cst_66 : f32 to vector<16x1xf32>
    %233 = arith.divf %231, %232 : vector<16x1xf32>
    %234 = vector.broadcast %233 : vector<16x1xf32> to vector<16x32xf32>
    %235 = arith.subf %227, %234 : vector<16x32xf32>
    %236 = arith.mulf %235, %235 : vector<16x32xf32>
    %cst_67 = arith.constant dense<0.000000e+00> : vector<16xf32>
    %237 = vector.multi_reduction <add>, %236, %cst_67 [1] : vector<16x32xf32> to vector<16xf32>
    %238 = vector.shape_cast %237 : vector<16xf32> to vector<16x1xf32>
    %cst_68 = arith.constant 3.200000e+01 : f32
    %239 = vector.broadcast %cst_68 : f32 to vector<16x1xf32>
    %240 = arith.divf %238, %239 : vector<16x1xf32>
    %cst_69 = arith.constant 9.99999974E-6 : f32
    %241 = vector.broadcast %cst_69 : f32 to vector<16x1xf32>
    %242 = arith.addf %240, %241 : vector<16x1xf32>
    %243 = math.rsqrt %242 : vector<16x1xf32>
    %244 = vector.broadcast %243 : vector<16x1xf32> to vector<16x32xf32>
    %245 = arith.mulf %235, %244 : vector<16x32xf32>
    %246 = vector.broadcast %228 : vector<1x32xf32> to vector<16x32xf32>
    %247 = arith.mulf %245, %246 : vector<16x32xf32>
    %248 = vector.broadcast %229 : vector<1x32xf32> to vector<16x32xf32>
    %249 = arith.addf %247, %248 : vector<16x32xf32>
    %250 = vector.shape_cast %249 : vector<16x32xf32> to vector<2x8x32xf32>
    %cst_70 = arith.constant dense<0.000000e+00> : vector<2x32xf32>
    %251 = vector.multi_reduction <add>, %250, %cst_70 [1] : vector<2x8x32xf32> to vector<2x32xf32>
    %cst_71 = arith.constant 8.000000e+00 : f32
    %252 = vector.broadcast %cst_71 : f32 to vector<2x32xf32>
    %253 = arith.divf %251, %252 : vector<2x32xf32>
    %c0_72 = arith.constant 0 : index
    %c0_73 = arith.constant 0 : index
    %254 = vector.load %arg8[%c0_72, %c0_73] : memref<33x128xf32, #tpu.memory_space<vmem>>, vector<32x128xf32>
    %c32 = arith.constant 32 : index
    %c0_74 = arith.constant 0 : index
    %255 = vector.load %arg8[%c32, %c0_74] : memref<33x128xf32, #tpu.memory_space<vmem>>, vector<1x128xf32>
    %cst_75 = arith.constant dense<0.000000e+00> : vector<2x128xf32>
    %256 = tpu.matmul %253, %254, %cst_75 {dimension_numbers = #tpu.dot_dimension_numbers<[1], [0], [0], [1], [0, 0, 1, 1], [], []>} : vector<2x32xf32>, vector<32x128xf32>, vector<2x128xf32> -> vector<2x128xf32>
    %257 = vector.broadcast %255 : vector<1x128xf32> to vector<2x128xf32>
    %258 = arith.addf %256, %257 : vector<2x128xf32>
    %259 = arith.negf %258 : vector<2x128xf32>
    %260 = math.exp %259 : vector<2x128xf32>
    %cst_76 = arith.constant 1.000000e+00 : f32
    %261 = vector.broadcast %cst_76 : f32 to vector<2x128xf32>
    %262 = arith.addf %261, %260 : vector<2x128xf32>
    %263 = arith.divf %261, %262 : vector<2x128xf32>
    %c0_77 = arith.constant 0 : index
    %c0_78 = arith.constant 0 : index
    %264 = vector.load %arg9[%c0_77, %c0_78] : memref<2x128xf32, #tpu.memory_space<vmem>>, vector<2x128xf32>
    tpu.vector_store %arg9[%c0_77, %c0_78], %263 {strides = array<i32>} : memref<2x128xf32, #tpu.memory_space<vmem>>, vector<2x128xf32>,
    return
  }
  func.func @transform_0(%arg0: i32) -> (i32, i32) {
    %c0_i32 = arith.constant 0 : i32
    %c0_i32_0 = arith.constant 0 : i32
    return %arg0, %c0_i32 : i32, i32
  }
  func.func @transform_1(%arg0: i32) -> (i32, i32) {
    %c0_i32 = arith.constant 0 : i32
    %c0_i32_0 = arith.constant 0 : i32
    %c0_i32_1 = arith.constant 0 : i32
    return %c0_i32, %c0_i32_0 : i32, i32
  }
  func.func @transform_2(%arg0: i32) -> (i32, i32, i32) {
    %c0_i32 = arith.constant 0 : i32
    %c0_i32_0 = arith.constant 0 : i32
    %c0_i32_1 = arith.constant 0 : i32
    %c0_i32_2 = arith.constant 0 : i32
    return %c0_i32, %c0_i32_0, %c0_i32_1 : i32, i32, i32
  }
  func.func @transform_3(%arg0: i32) -> (i32, i32, i32) {
    %c0_i32 = arith.constant 0 : i32
    %c0_i32_0 = arith.constant 0 : i32
    %c0_i32_1 = arith.constant 0 : i32
    %c0_i32_2 = arith.constant 0 : i32
    return %c0_i32, %c0_i32_0, %c0_i32_1 : i32, i32, i32
  }
  func.func @transform_4(%arg0: i32) -> (i32, i32, i32) {
    %c0_i32 = arith.constant 0 : i32
    %c0_i32_0 = arith.constant 0 : i32
    %c0_i32_1 = arith.constant 0 : i32
    %c0_i32_2 = arith.constant 0 : i32
    return %c0_i32, %c0_i32_0, %c0_i32_1 : i32, i32, i32
  }
  func.func @transform_5(%arg0: i32) -> (i32, i32, i32) {
    %c0_i32 = arith.constant 0 : i32
    %c0_i32_0 = arith.constant 0 : i32
    %c0_i32_1 = arith.constant 0 : i32
    %c0_i32_2 = arith.constant 0 : i32
    return %c0_i32, %c0_i32_0, %c0_i32_1 : i32, i32, i32
  }
  func.func @transform_6(%arg0: i32) -> (i32, i32, i32) {
    %c0_i32 = arith.constant 0 : i32
    %c0_i32_0 = arith.constant 0 : i32
    %c0_i32_1 = arith.constant 0 : i32
    %c0_i32_2 = arith.constant 0 : i32
    return %c0_i32, %c0_i32_0, %c0_i32_1 : i32, i32, i32
  }
  func.func @transform_7(%arg0: i32) -> (i32, i32) {
    %c0_i32 = arith.constant 0 : i32
    %c0_i32_0 = arith.constant 0 : i32
    %c0_i32_1 = arith.constant 0 : i32
    return %c0_i32, %c0_i32_0 : i32, i32
  }
  func.func @transform_8(%arg0: i32) -> (i32, i32) {
    %c0_i32 = arith.constant 0 : i32
    %c0_i32_0 = arith.constant 0 : i32
    return %arg0, %c0_i32 : i32, i32
  }
}

</mosaic_0001>

<bundles_post_ra>
// kernel: tpu_custom_call.1
= control target key start
LH: loop header
LB: loop body
LE: loop exit
PB: predicated region body
PF: predicated region fallthrough
CT: control target
= control target key end

     0   :  { %13 = vsyncpa [#allocation3], 0  ;;  %s5375_s0 = inlined_call_operand.vmem [shape: s32[16,1], index: 0, kind: input, shape index: {}]   ;;  %s5376_s1 = inlined_call_operand.hbm [shape: f32[32,32], index: 1, kind: input, shape index: {}]   ;;  %s5377_s2 = inlined_call_operand.vmem [shape: f32[2,32,128], index: 2, kind: input, shape index: {}]   ;;  %s5378_s3 = inlined_call_operand.vmem [shape: f32[2,32,32], index: 3, kind: input, shape index: {}]   ;;  %s5379_s4 = inlined_call_operand.vmem [shape: f32[2,32,64], index: 4, kind: input, shape index: {}]   ;;  %s5380_s5 = inlined_call_operand.vmem [shape: f32[2,64,32], index: 5, kind: input, shape index: {}]   ;;  %s5381_s6 = inlined_call_operand.hbm [shape: f32[2,8,128], index: 6, kind: input, shape index: {}]   ;;  %s5382_s7 = inlined_call_operand.vmem [shape: f32[33,128], index: 7, kind: input, shape index: {}]   ;;  %s5383_s8 = inlined_call_operand.hbm [shape: f32[2,128], index: 8, kind: output, shape index: {}]  }
   0x1   :  { %14 = vsyncpa [#allocation6], 0 }
   0x2   :  { %15 = vsyncpa [#allocation4], 0  ;;  %s4652_s27 = smov [#allocation2]   ;;  %s4580_s9 = scalar_lea.hbm %s5376_s1, 512 }
   0x3   :  { %s23_s28 = sshll.u32 %s4652_s27, 4  ;;  %p4581_p0 = scmp.ne.s32.totalorder %s5376_s1, %s4580_s9  ;;  %s24_s28 = int_to_ptr.vmem [resolvable:$true] %s23_s28 }
   0x4   :  { %p4584_p1 = scmp.lt.u32.totalorder %s4580_s9, %s5376_s1 }
   0x6   :  { %p4586_p2 = pnand %p4584_p1, %p4581_p0 }
   0x8   :  { %4589 = shalt.err (!%p4586_p2)
}
   0x9   :  { %s4590_s14 = scalar_lea.vmem %s24_s28, 512  ;;  %p4595_p4 = scmp.lt.s32.totalorder %s24_s28, %s24_s28 }
   0xa   :  { %p4591_p3 = scmp.ne.s32.totalorder %s24_s28, %s4590_s14  ;;  %p4596_p5 = scmp.lt.s32.totalorder %s4590_s14, %s4590_s14 }
   0xc   :  { %p4597_p6 = por %p4596_p5, %p4595_p4 }
   0xe   :  { %p4598_p7 = pnand %p4597_p6, %p4591_p3 }
  0x10   :  { %4601 = shalt.err (!%p4598_p7)
}
  0x11   :  { %s4653_s15 = smov 128   ;;  %s4654_s16 = smov 8  }
  0x12   :  { %29 = dma.hbm_to_vmem [thread:$0]  %s5376_s1, 512, %s24_s28, [#allocation3], %s4653_s15, %s4653_s15, %s4654_s16  }
  0x13   :  { %s4655_s19 = smov [#allocation5]   ;;  %s4602_s23 = scalar_lea.hbm %s5381_s6, 256 }
  0x14   :  { %s43_s20 = sshll.u32 %s4655_s19, 4  ;;  %p4603_p8 = scmp.ne.s32.totalorder %s5381_s6, %s4602_s23  ;;  %s44_s20 = int_to_ptr.vmem [resolvable:$true] %s43_s20 }
  0x15   :  { %p4606_p9 = scmp.lt.u32.totalorder %s4602_s23, %s5381_s6 }
  0x17   :  { %p4608_p10 = pnand %p4606_p9, %p4603_p8 }
  0x19   :  { %4611 = shalt.err (!%p4608_p10)
}
  0x1a   :  { %s4612_s29 = scalar_lea.vmem %s44_s20, 256  ;;  %p4617_p12 = scmp.lt.s32.totalorder %s44_s20, %s44_s20 }
  0x1b   :  { %p4613_p11 = scmp.ne.s32.totalorder %s44_s20, %s4612_s29  ;;  %p4618_p13 = scmp.lt.s32.totalorder %s4612_s29, %s4612_s29 }
  0x1d   :  { %p4619_p0 = por %p4618_p13, %p4617_p12 }
  0x1f   :  { %p4620_p1 = pnand %p4619_p0, %p4613_p11 }
  0x21   :  { %4623 = shalt.err (!%p4620_p1)
}
  0x22   :  { %49 = dma.hbm_to_vmem [thread:$0]  %s5381_s6, 256, %s44_s20, [#allocation6], %s4653_s15, %s4653_s15, %s4654_s16  }
  0x23   :  { %4646 = dma.done.wait [#allocation3], 512  }
  0x24   :  { %4647 = vsyncadd [#allocation3], 4294966784 }
  0x25   :  { %4648 = dma.done.wait [#allocation6], 256  }
  0x26   :  { %4649 = vsyncadd [#allocation6], 4294967040  ;;  %v4656_v0 = vmov 0   ;;  %v58_v1 = vld [vmem:[%s5375_s0] sm:$0xff]  ;;  %v60_v2 = vld [vmem:[#allocation2] sm:$0xff]  ;;  %v4657_v15 = vmov 0.0   ;;  %v64_v16 = vlaneseq }
  0x27   :  { %4495 = vset.pattern.permute.xlu0 %v4656_v0  ;;  %v61_v3 = vld [vmem:[#allocation2 + $0x8] sm:$0xff]  ;;  %v62_v4 = vld [vmem:[#allocation2 + $0x10] sm:$0xff]  ;;  %v63_v5 = vld [vmem:[#allocation2 + $0x18] sm:$0xff]  ;;  %vm78_vm0 = vcmask 261120   ;;  %vm4658_vm3 = vmmov 0   ;;  %s4659_s19 = smov 112  }
  0x28   :  { %67 = vperm.xlu0 %4495, %v58_v1   ;;  %v59_v6 = vld [vmem:[%s5375_s0 + $0x8] sm:$0xff]  ;;  %v4385_v7 = vpack.c.bf16 %v61_v3, %v60_v2  ;;  %v4389_v8 = vpack.c.bf16 %v63_v5, %v62_v4  ;;  %v161_v9 = vld [vmem:[%s5377_s2] sm:$0xff]  ;;  %v163_v11 = vld [vmem:[%s5377_s2 + $0x10] sm:$0xff]  ;;  %v65_v17 = vand.u32 127, %v64_v16  ;;  %v4771_v24 = vshrl.u32 %v64_v16, 7  ;;  %s4660_s20 = smov 120  }
  0x29   :  { %v162_v10 = vld [vmem:[%s5377_s2 + $0x8] sm:$0xff]  ;;  %v164_v13 = vld [vmem:[%s5377_s2 + $0x18] sm:$0xff]  ;;  %s4661_s21 = smov 104   ;;  %s4662_s22 = smov 96   ;;  %vm266_vm4 = vcmask 64512   ;;  %vm1595_vm5 = vcmask 130048  }
  0x2a   :  { %4386 = vmatprep.subr.bf16.mxu0 %v4385_v7  ;;  %v4393_v12 = vpack.c.bf16 %v162_v10, %v161_v9  ;;  %v4397_v14 = vpack.c.bf16 %v164_v13, %v163_v11  ;;  %v167_v25 = vsub.s32 0, %v4771_v24  ;;  %v4774_v26 = vld [vmem:[#allocation5] sm:$0xff]  ;;  %s4663_s23 = smov 64   ;;  %s4664_s9 = smov 16   ;;  %vm1598_vm6 = vcmask 195584  }
  0x2b   :  { %4388 = vmatpush3.bf16.msra.mxu0 %v4385_v7  ;;  %s4665_s10 = smov 24   ;;  %vm1834_vm7 = vcmask 523264   ;;  %vm3780_vm8 = vcmask 1041409   ;;  %s4667_s6 = smov [#allocation7]  }
  0x2c   :  { %70 = vperm.xlu0 %4495, %v59_v6   ;;  %4390 = vmatprep.subr.bf16.mxu0 %v4389_v8  ;;  %v168_v27 = vrot.slane %v4774_v26, %v167_v25  ;;  %s3867_s12 = sshll.u32 %s4667_s6, 4  ;;  %s3868_s12 = int_to_ptr.vmem [resolvable:$true] %s3867_s12 }
  0x2d   :  { %4394 = vmatprep.subr.bf16.mxu1 %v4393_v12  ;;  %s4624_s13 = scalar_lea.vmem %s3868_s12, 32  ;;  %p4629_p3 = scmp.lt.s32.totalorder %s3868_s12, %s3868_s12 }
  0x2e   :  { %4396 = vmatpush3.bf16.msra.mxu1 %v4393_v12  ;;  %p4625_p2 = scmp.ne.s32.totalorder %s3868_s12, %s4624_s13  ;;  %p4630_p4 = scmp.lt.s32.totalorder %s4624_s13, %s4624_s13 }
  0x2f   :  { %4392 = vmatpush3.bf16.msra.mxu0 %v4389_v8  ;;  %4398 = vmatprep.subr.bf16.mxu1 %v4397_v14 }
  0x30   :  { %4131 = vmatprep.subr.mxu0 %v4657_v15  ;;  %p4631_p5 = por %p4630_p4, %p4629_p3 }
  0x32   :  { %4400 = vmatpush3.bf16.msra.mxu1 %v4397_v14  ;;  %p4632_p6 = pnand %p4631_p5, %p4625_p2 }
  0x33   :  { %4121 = vmatprep.subr.mxu1 %v4657_v15 }
  0xa7   :  { %v68_v18 = vpop.permute.xlu0 %67 }
  0xa8   :  { %vm72_vm1 = vcmp.eq.s32.totalorder %v68_v18, %v65_v17 }
  0xa9   :  { %v3877_v19 = vsel %vm72_vm1, 1.0, %v4657_v15 }
  0xaa   :  { %4107 = vmatprep.mubr.msk.f32.mxu0 %vm78_vm0, %v3877_v19 }
  0xab   :  { %v71_v20 = vpop.permute.xlu0 %70 }
  0xac   :  { %vm73_vm2 = vcmp.eq.s32.totalorder %v71_v20, %v65_v17 }
  0xad   :  { %v3878_v21 = vsel %vm73_vm2, 1.0, %v4657_v15 }
  0xae   :  { %4108 = vmatmul.mubr.msk.f32.vlgmr.msra.gmra.mrb[0].mxu0 %vm78_vm0, %v3878_v21 }
  0xaf   :  { %4133 = vmatprep.mubr.msk.f32.mxu0 %vm4658_vm3, %v4657_v15 }
 0x181   :  { %v4763_v22 = vpop.f32.mrb[0].mxu0 }
 0x182   :  { %v4765_v23 = vpop.f32.mrb[1].mxu0 }
 0x183   :  { %4118 = vmatprep.mubr.msk.f32.mxu1 %vm78_vm0, %v4765_v23 }
 0x184   :  { %4119 = vmatmul.mubr.msk.f32.vlgmr.msra.gmra.mrb[0].mxu1 %vm78_vm0, %v4763_v22 }
 0x185   :  { %4123 = vmatprep.mubr.msk.f32.mxu1 %vm4658_vm3, %v4657_v15 }
 0x257   :  { %v4120_v28 = vpop.f32.mrb[0].mxu1 }
 0x258   :  { %v241_v29 = vpop.f32.mrb[1].mxu1  ;;  %v4789_v31 = vadd.f32 %v4120_v28, %v168_v27 }
 0x259   :  { %v4783_v30 = vadd.f32 %v241_v29, %v168_v27 }
 0x25b   :  { %256 = vrot.lane.b32.xlu0 %v4783_v30, %s4659_s19  ;;  %252 = vrot.lane.b32.xlu1 %v4783_v30, %s4660_s20 }
 0x25f   :  { %260 = vrot.lane.b32.xlu0 %v4783_v30, %s4661_s21  ;;  %254 = vrot.lane.b32.xlu1 %v4789_v31, %s4660_s20 }
 0x263   :  { %264 = vrot.lane.b32.xlu0 %v4783_v30, %s4662_s22  ;;  %258 = vrot.lane.b32.xlu1 %v4789_v31, %s4659_s19 }
 0x267   :  { %262 = vrot.lane.b32.xlu1 %v4789_v31, %s4661_s21 }
 0x26b   :  { %341 = vrot.lane.b32.xlu1 %v4789_v31, %s4662_s22 }
 0x2cd   :  { %v4803_v32 = vpop.permute.xlu0 %256  ;;  %v4805_v33 = vpop.permute.xlu1 %252 }
 0x2ce   :  { %417 = vrot.lane.b32.xlu0 %v4805_v33, %s4662_s22 }
 0x2d1   :  { %v4809_v34 = vpop.permute.xlu0 %260  ;;  %v4811_v35 = vpop.permute.xlu1 %254 }
 0x2d2   :  { %569 = vrot.lane.b32.xlu0 %v4803_v32, %s4662_s22  ;;  %493 = vrot.lane.b32.xlu1 %v4811_v35, %s4662_s22 }
 0x2d5   :  { %v265_v36 = vpop.permute.xlu0 %264  ;;  %v4817_v37 = vpop.permute.xlu1 %258 }
 0x2d6   :  { %4122 = vmatpush3.xpose.msk.msra.mxu1 %vm266_vm4, %v265_v36  ;;  %721 = vrot.lane.b32.xlu0 %v4809_v34, %s4662_s22 }
 0x2d7   :  { %645 = vrot.lane.b32.xlu1 %v4817_v37, %s4662_s22  ;;  %4126 = vmatprep.subr.mxu1 %v4657_v15 }
 0x2d9   :  { %4124 = vmatmul.mubr.msk.f32.vlgmr.msra.gmra.mrb[2].mxu1 %vm266_vm4, %v4783_v30  ;;  %v4827_v38 = vpop.permute.xlu1 %262 }
 0x2da   :  { %4128 = vmatprep.mubr.msk.f32.mxu1 %vm4658_vm3, %v4657_v15 }
 0x2db   :  { %797 = vrot.lane.b32.xlu1 %v4827_v38, %s4662_s22 }
 0x2dd   :  { %v342_v39 = vpop.permute.xlu1 %341 }
 0x2de   :  { %4127 = vmatpush3.xpose.msk.msra.mxu1 %vm266_vm4, %v342_v39 }
 0x2df   :  { %4136 = vmatprep.subr.mxu1 %v4657_v15 }
 0x2e1   :  { %4129 = vmatmul.mubr.msk.f32.vlgmr.msra.gmra.mrb[4].mxu1 %vm266_vm4, %v4789_v31 }
 0x2e2   :  { %4138 = vmatprep.mubr.msk.f32.mxu1 %vm4658_vm3, %v4657_v15 }
 0x340   :  { %v418_v40 = vpop.permute.xlu0 %417 }
 0x341   :  { %4132 = vmatpush3.xpose.msk.msra.mxu0 %vm266_vm4, %v418_v40 }
 0x342   :  { %4141 = vmatprep.subr.mxu0 %v4657_v15 }
 0x344   :  { %4134 = vmatmul.mubr.msk.f32.vlgmr.msra.gmra.mrb[2].mxu0 %vm266_vm4, %v4805_v33  ;;  %v570_v41 = vpop.permute.xlu0 %569  ;;  %v494_v42 = vpop.permute.xlu1 %493 }
 0x345   :  { %4137 = vmatpush3.xpose.msk.msra.mxu1 %vm266_vm4, %v494_v42  ;;  %4142 = vmatpush3.xpose.msk.msra.mxu0 %vm266_vm4, %v570_v41 }
 0x346   :  { %4143 = vmatprep.mubr.msk.f32.mxu0 %vm4658_vm3, %v4657_v15  ;;  %4151 = vmatprep.subr.mxu0 %v4657_v15 }
 0x347   :  { %4146 = vmatprep.subr.mxu1 %v4657_v15 }
 0x348   :  { %4144 = vmatmul.mubr.msk.f32.vlgmr.msra.gmra.mrb[4].mxu0 %vm266_vm4, %v4803_v32  ;;  %v722_v43 = vpop.permute.xlu0 %721  ;;  %4139 = vmatmul.mubr.msk.f32.vlgmr.msra.gmra.mrb[6].mxu1 %vm266_vm4, %v4811_v35 }
 0x349   :  { %v646_v44 = vpop.permute.xlu1 %645  ;;  %4152 = vmatpush3.xpose.msk.msra.mxu0 %vm266_vm4, %v722_v43  ;;  %4148 = vmatprep.mubr.msk.f32.mxu1 %vm4658_vm3, %v4657_v15 }
 0x34a   :  { %4147 = vmatpush3.xpose.msk.msra.mxu1 %vm266_vm4, %v646_v44  ;;  %4153 = vmatprep.mubr.msk.f32.mxu0 %vm4658_vm3, %v4657_v15 }
 0x34b   :  { %4156 = vmatprep.subr.mxu1 %v4657_v15  ;;  %4161 = vmatprep.subr.mxu0 %v4657_v15 }
 0x34c   :  { %4154 = vmatmul.mubr.msk.f32.vlgmr.msra.gmra.mrb[6].mxu0 %vm266_vm4, %v4809_v34 }
 0x34d   :  { %4149 = vmatmul.mubr.msk.f32.vlgmr.msra.gmra.mrb[8].mxu1 %vm266_vm4, %v4817_v37  ;;  %v798_v45 = vpop.permute.xlu1 %797  ;;  %4163 = vmatprep.mubr.msk.f32.mxu0 %vm4658_vm3, %v4657_v15 }
 0x34e   :  { %4157 = vmatpush3.xpose.msk.msra.mxu1 %vm266_vm4, %v798_v45  ;;  %4158 = vmatprep.mubr.msk.f32.mxu1 %vm4658_vm3, %v4657_v15 }
 0x34f   :  { %4166 = vmatprep.subr.mxu1 %v4657_v15 }
 0x351   :  { %4159 = vmatmul.mubr.msk.f32.vlgmr.msra.gmra.mrb[10].mxu1 %vm266_vm4, %v4827_v38 }
 0x352   :  { %4168 = vmatprep.mubr.msk.f32.mxu1 %vm4658_vm3, %v4657_v15 }
 0x3ac   :  { %v337_v46 = vpop.f32.mrb[2].mxu1 }
 0x3ad   :  { %v4125_v47 = vpop.f32.mrb[3].mxu1  ;;  %v873_v48 = vsel %vm266_vm4, %v337_v46, -inf }
 0x3ae   :  { %874 = vmax.xlane.f32.xlu0 %v873_v48 }
 0x3b4   :  { %v413_v49 = vpop.f32.mrb[4].mxu1 }
 0x3b5   :  { %v4130_v50 = vpop.f32.mrb[5].mxu1  ;;  %v876_v51 = vsel %vm266_vm4, %v413_v49, -inf }
 0x3b6   :  { %877 = vmax.xlane.f32.xlu1 %v876_v51 }
 0x417   :  { %v489_v52 = vpop.f32.mrb[2].mxu0 }
 0x418   :  { %v4135_v53 = vpop.f32.mrb[3].mxu0  ;;  %v879_v54 = vsel %vm266_vm4, %v489_v52, -inf }
 0x419   :  { %880 = vmax.xlane.f32.xlu0 %v879_v54 }
 0x41b   :  { %v565_v55 = vpop.f32.mrb[6].mxu1  ;;  %v641_v56 = vpop.f32.mrb[4].mxu0 }
 0x41c   :  { %v4140_v57 = vpop.f32.mrb[7].mxu1  ;;  %v4145_v58 = vpop.f32.mrb[5].mxu0  ;;  %v885_v59 = vsel %vm266_vm4, %v641_v56, -inf  ;;  %v882_v60 = vsel %vm266_vm4, %v565_v55, -inf }
 0x41d   :  { %886 = vmax.xlane.f32.xlu1 %v885_v59  ;;  %883 = vmax.xlane.f32.xlu0 %v882_v60 }
 0x41f   :  { %v793_v61 = vpop.f32.mrb[6].mxu0 }
 0x420   :  { %v717_v62 = vpop.f32.mrb[8].mxu1  ;;  %v4155_v63 = vpop.f32.mrb[7].mxu0  ;;  %v891_v0 = vsel %vm266_vm4, %v793_v61, -inf }
 0x421   :  { %v4150_v1 = vpop.f32.mrb[9].mxu1  ;;  %892 = vmax.xlane.f32.xlu1 %v891_v0  ;;  %v888_v2 = vsel %vm266_vm4, %v717_v62, -inf }
 0x422   :  { %889 = vmax.xlane.f32.xlu0 %v888_v2 }
 0x424   :  { %v869_v3 = vpop.f32.mrb[10].mxu1 }
 0x425   :  { %v4160_v4 = vpop.f32.mrb[11].mxu1  ;;  %v894_v5 = vsel %vm266_vm4, %v869_v3, -inf }
 0x426   :  { %895 = vmax.xlane.f32.xlu0 %v894_v5 }
 0x432   :  { %961 = vrot.lane.b32.xlu1 %v4783_v30, %s4663_s23 }
 0x436   :  { %1113 = vrot.lane.b32.xlu1 %v4805_v33, %s4663_s23 }
 0x43a   :  { %1189 = vrot.lane.b32.xlu1 %v4811_v35, %s4663_s23 }
 0x43b   :  { %v875_v7 = vpop.xlane.xlu0 %874 }
 0x43c   :  { %1037 = vrot.lane.b32.xlu0 %v4789_v31, %s4663_s23  ;;  %v897_v9 = vsub.f32 %v337_v46, %v875_v7 }
 0x43e   :  { %1341 = vrot.lane.b32.xlu1 %v4817_v37, %s4663_s23  ;;  %v905_v11 = vmul.f32 1.442695, %v897_v9 }
 0x440   :  { %1265 = vrot.lane.b32.xlu0 %v4803_v32, %s4663_s23 }
 0x443   :  { %v878_v6 = vpop.xlane.xlu1 %877 }
 0x444   :  { %v898_v8 = vsub.f32 %v413_v49, %v878_v6 }
 0x446   :  { %v907_v10 = vmul.f32 1.442695, %v898_v8 }
 0x448   :  { %4496 = vpow2.f32 %v907_v10 }
 0x449   :  { %4498 = vpow2.f32 %v905_v11 }
 0x452   :  { %v4895_v12 = vpop.eup %4496 }
 0x453   :  { %v4897_v13 = vpop.eup %4498  ;;  %v924_v14 = vsel %vm266_vm4, %v4895_v12, 0.0 }
 0x454   :  { %v921_v16 = vsel %vm266_vm4, %v4897_v13, 0.0 }
 0x45f   :  { %925 = vadd.xlane.f32.xlu0 %v924_v14 }
 0x462   :  { %922 = vadd.xlane.f32.xlu1 %v921_v16 }
 0x4a6   :  { %v881_v17 = vpop.xlane.xlu0 %880 }
 0x4a7   :  { %v899_v18 = vsub.f32 %v489_v52, %v881_v17 }
 0x4a9   :  { %v909_v19 = vmul.f32 1.442695, %v899_v18 }
 0x4aa   :  { %v884_v20 = vpop.xlane.xlu0 %883  ;;  %v887_v21 = vpop.xlane.xlu1 %886 }
 0x4ab   :  { %4500 = vpow2.f32 %v909_v19  ;;  %v900_v27 = vsub.f32 %v565_v55, %v884_v20  ;;  %v901_v28 = vsub.f32 %v641_v56, %v887_v21 }
 0x4ad   :  { %v911_v29 = vmul.f32 1.442695, %v900_v27  ;;  %v913_v30 = vmul.f32 1.442695, %v901_v28 }
 0x4ae   :  { %v893_v31 = vpop.xlane.xlu1 %892 }
 0x4af   :  { %4502 = vpow2.f32 %v911_v29  ;;  %v890_v32 = vpop.xlane.xlu0 %889  ;;  %v903_v33 = vsub.f32 %v793_v61, %v893_v31  ;;  %v1602_v31 = vld [vmem:[%s5378_s3 + $0x8] sm:$0xff] }
 0x4b0   :  { %4504 = vpow2.f32 %v913_v30  ;;  %v902_v35 = vsub.f32 %v717_v62, %v890_v32  ;;  %v1601_v30 = vld [vmem:[%s5378_s3] sm:$0xff] }
 0x4b1   :  { %v917_v36 = vmul.f32 1.442695, %v903_v33  ;;  %v4401_v32 = vpack.c.bf16 %v1602_v31, %v1601_v30  ;;  %v1603_v33 = vld [vmem:[%s5378_s3 + $0x10] sm:$0xff]  ;;  %v1825_v30 = vld [vmem:[%s5380_s5 + $0x18] sm:$0xff] }
 0x4b2   :  { %v915_v37 = vmul.f32 1.442695, %v902_v35  ;;  %v962_v39 = vpop.permute.xlu1 %961  ;;  %v1604_v35 = vld [vmem:[%s5378_s3 + $0x18] sm:$0xff] }
 0x4b3   :  { %4506 = vpow2.f32 %v917_v36  ;;  %v896_v40 = vpop.xlane.xlu0 %895  ;;  %4162 = vmatpush3.msra.mxu0 %v962_v39  ;;  %v4405_v36 = vpack.c.bf16 %v1604_v35, %v1603_v33  ;;  %v1827_v33 = vld [vmem:[%s5380_s5 + $0x28] sm:$0xff] }
 0x4b4   :  { %4508 = vpow2.f32 %v915_v37  ;;  %v904_v41 = vsub.f32 %v869_v3, %v896_v40  ;;  %4171 = vmatprep.subr.mxu0 %v4657_v15 }
 0x4b5   :  { %v4501_v42 = vpop.eup %4500 }
 0x4b6   :  { %v919_v43 = vmul.f32 1.442695, %v904_v41  ;;  %v927_v44 = vsel %vm266_vm4, %v4501_v42, 0.0  ;;  %v1114_v56 = vpop.permute.xlu1 %1113 }
 0x4b7   :  { %v1038_v45 = vpop.permute.xlu0 %1037  ;;  %928 = vadd.xlane.f32.xlu1 %v927_v44 }
 0x4b8   :  { %4510 = vpow2.f32 %v919_v43  ;;  %4167 = vmatpush3.msra.mxu1 %v1038_v45 }
 0x4b9   :  { %v4503_v46 = vpop.eup %4502  ;;  %4176 = vmatprep.subr.mxu1 %v4657_v15 }
 0x4ba   :  { %v4505_v47 = vpop.eup %4504  ;;  %v930_v48 = vsel %vm266_vm4, %v4503_v46, 0.0  ;;  %v1190_v57 = vpop.permute.xlu1 %1189 }
 0x4bb   :  { %931 = vadd.xlane.f32.xlu0 %v930_v48  ;;  %v933_v49 = vsel %vm266_vm4, %v4505_v47, 0.0  ;;  %v1266_v58 = vpop.permute.xlu0 %1265 }
 0x4bc   :  { %934 = vadd.xlane.f32.xlu1 %v933_v49 }
 0x4bd   :  { %v4908_v50 = vpop.eup %4506 }
 0x4be   :  { %v4509_v51 = vpop.eup %4508  ;;  %v939_v52 = vsel %vm266_vm4, %v4908_v50, 0.0  ;;  %v1342_v59 = vpop.permute.xlu1 %1341 }
 0x4bf   :  { %v936_v53 = vsel %vm266_vm4, %v4509_v51, 0.0 }
 0x4c0   :  { %937 = vadd.xlane.f32.xlu0 %v936_v53  ;;  %940 = vadd.xlane.f32.xlu1 %v939_v52 }
 0x4c2   :  { %v4913_v54 = vpop.eup %4510 }
 0x4c3   :  { %v942_v55 = vsel %vm266_vm4, %v4913_v54, 0.0 }
 0x4c4   :  { %943 = vadd.xlane.f32.xlu0 %v942_v55 }
 0x4d1   :  { %1493 = vrot.lane.b32.xlu1 %v4827_v38, %s4663_s23 }
 0x4da   :  { %1417 = vrot.lane.b32.xlu0 %v4809_v34, %s4663_s23 }
 0x4ec   :  { %v926_v60 = vpop.xlane.xlu0 %925 }
 0x4ed   :  { %4512 = vrcp.f32 %v926_v60 }
 0x4ef   :  { %v923_v61 = vpop.xlane.xlu1 %922 }
 0x4f0   :  { %4514 = vrcp.f32 %v923_v61 }
 0x4f7   :  { %v4513_v62 = vpop.eup %4512 }
 0x4f8   :  { %v948_v63 = vmul.f32 %v4513_v62, %v4895_v12  ;;  %v1607_v62 = vsub.s32 1, %v4771_v24 }
 0x4fa   :  { %v4515_v0 = vpop.eup %4514  ;;  %4169 = vmatmul.mubr.msk.f32.vlgmr.msra.gmra.mrb[12].mxu1 %vm266_vm4, %v948_v63  ;;  %v1608_v63 = vrot.slane %v4774_v26, %v1607_v62 }
 0x4fb   :  { %v946_v1 = vmul.f32 %v4515_v0, %v4897_v13  ;;  %4177 = vmatpush3.msra.mxu1 %v1190_v57  ;;  %4178 = vmatprep.mubr.msk.f32.mxu1 %vm4658_vm3, %v4657_v15 }
 0x4fc   :  { %4186 = vmatprep.subr.mxu1 %v4657_v15 }
 0x4fd   :  { %4164 = vmatmul.mubr.msk.f32.vlgmr.msra.gmra.mrb[8].mxu0 %vm266_vm4, %v946_v1 }
 0x4fe   :  { %4172 = vmatpush3.msra.mxu0 %v1114_v56  ;;  %4173 = vmatprep.mubr.msk.f32.mxu0 %vm4658_vm3, %v4657_v15 }
 0x4ff   :  { %4181 = vmatprep.subr.mxu0 %v4657_v15 }
 0x544   :  { %v929_v34 = vpop.xlane.xlu1 %928 }
 0x545   :  { %4516 = vrcp.f32 %v929_v34 }
 0x548   :  { %v932_v38 = vpop.xlane.xlu0 %931 }
 0x549   :  { %4518 = vrcp.f32 %v932_v38  ;;  %v935_v2 = vpop.xlane.xlu1 %934 }
 0x54a   :  { %4520 = vrcp.f32 %v935_v2 }
 0x54d   :  { %v938_v3 = vpop.xlane.xlu0 %937  ;;  %v941_v4 = vpop.xlane.xlu1 %940 }
 0x54e   :  { %4522 = vrcp.f32 %v938_v3 }
 0x54f   :  { %v4517_v5 = vpop.eup %4516  ;;  %4524 = vrcp.f32 %v941_v4 }
 0x550   :  { %v950_v6 = vmul.f32 %v4517_v5, %v4501_v42 }
 0x551   :  { %v944_v7 = vpop.xlane.xlu0 %943  ;;  %v1494_v18 = vpop.permute.xlu1 %1493 }
 0x552   :  { %4526 = vrcp.f32 %v944_v7  ;;  %4174 = vmatmul.mubr.msk.f32.vlgmr.msra.gmra.mrb[10].mxu0 %vm266_vm4, %v950_v6 }
 0x553   :  { %v4519_v8 = vpop.eup %4518  ;;  %4182 = vmatpush3.msra.mxu0 %v1266_v58  ;;  %4183 = vmatprep.mubr.msk.f32.mxu0 %vm4658_vm3, %v4657_v15 }
 0x554   :  { %v4521_v9 = vpop.eup %4520  ;;  %v952_v10 = vmul.f32 %v4519_v8, %v4503_v46  ;;  %4191 = vmatprep.subr.mxu0 %v4657_v15 }
 0x555   :  { %v954_v11 = vmul.f32 %v4521_v9, %v4505_v47  ;;  %v1418_v12 = vpop.permute.xlu0 %1417 }
 0x556   :  { %4179 = vmatmul.mubr.msk.f32.vlgmr.msra.gmra.mrb[14].mxu1 %vm266_vm4, %v952_v10 }
 0x557   :  { %4184 = vmatmul.mubr.msk.f32.vlgmr.msra.gmra.mrb[12].mxu0 %vm266_vm4, %v954_v11  ;;  %4187 = vmatpush3.msra.mxu1 %v1342_v59 }
 0x558   :  { %v4523_v13 = vpop.eup %4522  ;;  %4192 = vmatpush3.msra.mxu0 %v1418_v12  ;;  %4188 = vmatprep.mubr.msk.f32.mxu1 %vm4658_vm3, %v4657_v15 }
 0x559   :  { %v4525_v14 = vpop.eup %4524  ;;  %v956_v16 = vmul.f32 %v4523_v13, %v4509_v51  ;;  %4193 = vmatprep.mubr.msk.f32.mxu0 %vm4658_vm3, %v4657_v15  ;;  %4196 = vmatprep.subr.mxu1 %v4657_v15 }
 0x55a   :  { %v958_v17 = vmul.f32 %v4525_v14, %v4908_v50  ;;  %4402 = vmatprep.subr.bf16.mxu0 %v4401_v32 }
 0x55b   :  { %4189 = vmatmul.mubr.msk.f32.vlgmr.msra.gmra.mrb[16].mxu1 %vm266_vm4, %v956_v16  ;;  %v1732_v16 = vld [vmem:[%s5379_s4 + $0x8] sm:$0xff] }
 0x55c   :  { %v4527_v19 = vpop.eup %4526  ;;  %4194 = vmatmul.mubr.msk.f32.vlgmr.msra.gmra.mrb[14].mxu0 %vm266_vm4, %v958_v17  ;;  %4197 = vmatpush3.msra.mxu1 %v1494_v18  ;;  %v1733_v18 = vld [vmem:[%s5379_s4 + $0x10] sm:$0xff] }
 0x55d   :  { %v960_v20 = vmul.f32 %v4527_v19, %v4913_v54  ;;  %4198 = vmatprep.mubr.msk.f32.mxu1 %vm4658_vm3, %v4657_v15  ;;  %4404 = vmatpush3.bf16.msra.mxu0 %v4401_v32  ;;  %v1734_v19 = vld [vmem:[%s5379_s4 + $0x18] sm:$0xff]  ;;  %v1826_v32 = vld [vmem:[%s5380_s5 + $0x20] sm:$0xff] }
 0x55e   :  { %4406 = vmatprep.subr.bf16.mxu0 %v4405_v36  ;;  %v4425_v35 = vpack.c.bf16 %v1827_v33, %v1826_v32 }
 0x55f   :  { %4199 = vmatmul.mubr.msk.f32.vlgmr.msra.gmra.mrb[18].mxu1 %vm266_vm4, %v960_v20  ;;  %v4413_v20 = vpack.c.bf16 %v1734_v19, %v1733_v18 }
 0x561   :  { %4408 = vmatpush3.bf16.msra.mxu0 %v4405_v36 }
 0x5cd   :  { %v1109_v21 = vpop.f32.mrb[12].mxu1 }
 0x5ce   :  { %v4170_v27 = vpop.f32.mrb[13].mxu1 }
 0x5cf   :  { %v1823_v27 = vld [vmem:[%s5380_s5 + $0x8] sm:$0xff] }
 0x5d0   :  { %v1033_v28 = vpop.f32.mrb[8].mxu0 }
 0x5d1   :  { %v4165_v29 = vpop.f32.mrb[9].mxu0 }
 0x625   :  { %v1185_v37 = vpop.f32.mrb[10].mxu0 }
 0x626   :  { %1571 = vrot.lane.b32.xlu0 %v1185_v37, %s4654_s16  ;;  %v4175_v39 = vpop.f32.mrb[11].mxu0 }
 0x629   :  { %v1261_v40 = vpop.f32.mrb[14].mxu1 }
 0x62a   :  { %v1337_v41 = vpop.f32.mrb[12].mxu0  ;;  %1573 = vrot.lane.b32.xlu1 %v1261_v40, %s4654_s16  ;;  %v4180_v42 = vpop.f32.mrb[15].mxu1 }
 0x62b   :  { %1579 = vrot.lane.b32.xlu0 %v1337_v41, %s4664_s9  ;;  %v4185_v43 = vpop.f32.mrb[13].mxu0 }
 0x62c   :  { %v1721_v43 = vsub.s32 2, %v4771_v24 }
 0x62e   :  { %v1413_v44 = vpop.f32.mrb[16].mxu1 }
 0x62f   :  { %v1489_v45 = vpop.f32.mrb[14].mxu0  ;;  %1581 = vrot.lane.b32.xlu1 %v1413_v44, %s4664_s9  ;;  %v4190_v46 = vpop.f32.mrb[17].mxu1  ;;  %v1727_v44 = vsub.s32 3, %v4771_v24 }
 0x630   :  { %1587 = vrot.lane.b32.xlu0 %v1489_v45, %s4665_s10  ;;  %v4195_v47 = vpop.f32.mrb[15].mxu0  ;;  %v1722_v45 = vrot.slane %v4774_v26, %v1721_v43 }
 0x632   :  { %v1565_v48 = vpop.f32.mrb[18].mxu1 }
 0x633   :  { %1589 = vrot.lane.b32.xlu1 %v1565_v48, %s4665_s10  ;;  %v4200_v49 = vpop.f32.mrb[19].mxu1  ;;  %v1728_v48 = vrot.slane %v4774_v26, %v1727_v44 }
 0x698   :  { %v1572_v50 = vpop.permute.xlu0 %1571 }
 0x699   :  { %v1593_v53 = vsel %vm266_vm4, %v1033_v28, %v1572_v50  ;;  %v1824_v28 = vld [vmem:[%s5380_s5 + $0x10] sm:$0xff] }
 0x69a   :  { %v4421_v31 = vpack.c.bf16 %v1825_v30, %v1824_v28  ;;  %v3915_v28 = vld [vmem:[%s5377_s2 + $0x30] sm:$0xff] }
 0x69c   :  { %v1574_v51 = vpop.permute.xlu1 %1573 }
 0x69d   :  { %v1580_v52 = vpop.permute.xlu0 %1579  ;;  %v1594_v58 = vsel %vm266_vm4, %v1109_v21, %v1574_v51  ;;  %v1822_v21 = vld [vmem:[%s5380_s5] sm:$0xff] }
 0x69e   :  { %v1596_v55 = vsel %vm1595_vm5, %v1593_v53, %v1580_v52  ;;  %v4417_v29 = vpack.c.bf16 %v1823_v27, %v1822_v21  ;;  %v3914_v21 = vld [vmem:[%s5377_s2 + $0x28] sm:$0xff] }
 0x6a0   :  { %4418 = vmatprep.subr.bf16.mxu0 %v4417_v29 }
 0x6a1   :  { %v1582_v54 = vpop.permute.xlu1 %1581 }
 0x6a2   :  { %v1588_v56 = vpop.permute.xlu0 %1587  ;;  %v1597_v59 = vsel %vm1595_vm5, %v1594_v58, %v1582_v54  ;;  %v1737_v58 = vsub.s32 6, %v4771_v24 }
 0x6a3   :  { %v1599_v57 = vsel %vm1598_vm6, %v1596_v55, %v1588_v56  ;;  %v1828_v55 = vld [vmem:[%s5380_s5 + $0x30] sm:$0xff]  ;;  %v1829_v56 = vld [vmem:[%s5380_s5 + $0x38] sm:$0xff] }
 0x6a4   :  { %4209 = vmatprep.mubr.msk.f32.mxu0 %vm78_vm0, %v1599_v57  ;;  %v4429_v57 = vpack.c.bf16 %v1829_v56, %v1828_v55 }
 0x6a5   :  { %v1590_v60 = vpop.permute.xlu1 %1589 }
 0x6a6   :  { %v1600_v61 = vsel %vm1598_vm6, %v1597_v59, %v1590_v60  ;;  %v1738_v59 = vrot.slane %v4774_v26, %v1737_v58 }
 0x6a7   :  { %4210 = vmatmul.mubr.msk.f32.vlgmr.msra.gmra.mrb[16].mxu0 %vm78_vm0, %v1600_v61 }
 0x6a8   :  { %4420 = vmatpush3.bf16.msra.mxu0 %v4417_v29  ;;  %v3916_v29 = vld [vmem:[%s5377_s2 + $0x38] sm:$0xff] }
 0x6a9   :  { %4422 = vmatprep.subr.bf16.mxu0 %v4421_v31  ;;  %v4437_v30 = vpack.c.bf16 %v3916_v29, %v3915_v28 }
 0x6ac   :  { %4424 = vmatpush3.bf16.msra.mxu0 %v4421_v31 }
 0x6ad   :  { %4426 = vmatprep.subr.bf16.mxu0 %v4425_v35 }
 0x6b0   :  { %4428 = vmatpush3.bf16.msra.mxu0 %v4425_v35 }
 0x6b1   :  { %4430 = vmatprep.subr.bf16.mxu0 %v4429_v57 }
 0x6b4   :  { %4432 = vmatpush3.bf16.msra.mxu0 %v4429_v57 }
 0x6b5   :  { %4263 = vmatprep.subr.mxu0 %v4657_v15 }
 0x77a   :  { %v4211_v0 = vpop.f32.mrb[16].mxu0 }
 0x77b   :  { %v1687_v1 = vadd.f32 %v4211_v0, %v1608_v63  ;;  %v1681_v34 = vpop.f32.mrb[17].mxu0 }
 0x77c   :  { %v1682_v38 = vadd.f32 %v1681_v34, %v1608_v63 }
 0x77d   :  { %v1691_v2 = vadd.f32 %v4763_v22, %v1687_v1 }
 0x77e   :  { %v1690_v3 = vadd.f32 %v1682_v38, %v4765_v23  ;;  %v1731_v23 = vld [vmem:[%s5379_s4] sm:$0xff]  ;;  %v1832_v38 = vsub.s32 7, %v4771_v24 }
 0x77f   :  { %v1695_v4 = vsel %vm78_vm0, %v1691_v2, 0.0  ;;  %v4409_v17 = vpack.c.bf16 %v1732_v16, %v1731_v23 }
 0x780   :  { %1696 = vadd.xlane.f32.xlu1 %v1695_v4  ;;  %v1692_v5 = vsel %vm78_vm0, %v1690_v3, 0.0 }
 0x781   :  { %1693 = vadd.xlane.f32.xlu0 %v1692_v5  ;;  %4410 = vmatprep.subr.bf16.mxu1 %v4409_v17 }
 0x782   :  { %4412 = vmatpush3.bf16.msra.mxu1 %v4409_v17 }
 0x783   :  { %4414 = vmatprep.subr.bf16.mxu1 %v4413_v20 }
 0x786   :  { %4416 = vmatpush3.bf16.msra.mxu1 %v4413_v20  ;;  %v3913_v20 = vld [vmem:[%s5377_s2 + $0x20] sm:$0xff] }
 0x787   :  { %v4433_v27 = vpack.c.bf16 %v3914_v21, %v3913_v20 }
 0x789   :  { %4434 = vmatprep.subr.bf16.mxu1 %v4433_v27 }
 0x80d   :  { %v1697_v6 = vpop.xlane.xlu1 %1696 }
 0x80e   :  { %v1700_v7 = vmul.f32 0.03125, %v1697_v6  ;;  %v1694_v8 = vpop.xlane.xlu0 %1693 }
 0x80f   :  { %v1699_v9 = vmul.f32 0.03125, %v1694_v8 }
 0x810   :  { %v1702_v10 = vsub.f32 %v1691_v2, %v1700_v7  ;;  %v1833_v2 = vrot.slane %v4774_v26, %v1832_v38 }
 0x811   :  { %v1701_v11 = vsub.f32 %v1690_v3, %v1699_v9 }
 0x812   :  { %v1704_v14 = vmul.f32 %v1702_v10, %v1702_v10 }
 0x813   :  { %v1703_v12 = vmul.f32 %v1701_v11, %v1701_v11 }
 0x814   :  { %v1708_v22 = vsel %vm78_vm0, %v1704_v14, 0.0 }
 0x815   :  { %v1705_v13 = vsel %vm78_vm0, %v1703_v12, 0.0 }
 0x816   :  { %1706 = vadd.xlane.f32.xlu0 %v1705_v13 }
 0x81a   :  { %1709 = vadd.xlane.f32.xlu0 %v1708_v22 }
 0x8a3   :  { %v1707_v36 = vpop.xlane.xlu0 %1706 }
 0x8a4   :  { %v1711_v37 = vmul.f32 0.03125, %v1707_v36 }
 0x8a6   :  { %v1713_v39 = vadd.f32 1e-05, %v1711_v37 }
 0x8a7   :  { %v1710_v40 = vpop.xlane.xlu0 %1709 }
 0x8a8   :  { %4528 = vrsqrt.f32 %v1713_v39  ;;  %v1712_v41 = vmul.f32 0.03125, %v1710_v40  ;;  %v1946_v39 = vsub.s32 4, %v4771_v24  ;;  %v1952_v40 = vsub.s32 5, %v4771_v24 }
 0x8aa   :  { %v1714_v42 = vadd.f32 1e-05, %v1712_v41  ;;  %v1947_v41 = vrot.slane %v4774_v26, %v1946_v39 }
 0x8ac   :  { %4530 = vrsqrt.f32 %v1714_v42 }
 0x8b2   :  { %v4529_v46 = vpop.eup %4528 }
 0x8b3   :  { %v1717_v47 = vmul.f32 %v4529_v46, %v1701_v11 }
 0x8b5   :  { %v1723_v49 = vmul.f32 %v1722_v45, %v1717_v47 }
 0x8b6   :  { %v4531_v50 = vpop.eup %4530 }
 0x8b7   :  { %v1718_v51 = vmul.f32 %v4531_v50, %v1702_v10  ;;  %v1729_v52 = vadd.f32 %v1728_v48, %v1723_v49 }
 0x8b9   :  { %v1724_v53 = vmul.f32 %v1722_v45, %v1718_v51  ;;  %4220 = vmatprep.mubr.msk.f32.mxu1 %vm78_vm0, %v1729_v52 }
 0x8bb   :  { %v1730_v54 = vadd.f32 %v1728_v48, %v1724_v53  ;;  %v1953_v48 = vrot.slane %v4774_v26, %v1952_v40  ;;  %v5079_v53 = vld [vmem:[#allocation5 + $0x8] sm:$0xff] }
 0x8bc   :  { %v1966_v26 = vrot.slane %v5079_v53, %v167_v25 }
 0x8bd   :  { %4221 = vmatmul.mubr.msk.f32.vlgmr.msra.gmra.mrb[20].mxu1 %vm78_vm0, %v1730_v54 }
 0x8be   :  { %4436 = vmatpush3.bf16.msra.mxu1 %v4433_v27 }
 0x8bf   :  { %4438 = vmatprep.subr.bf16.mxu1 %v4437_v30 }
 0x8c2   :  { %4440 = vmatpush3.bf16.msra.mxu1 %v4437_v30 }
 0x8c3   :  { %4253 = vmatprep.subr.mxu1 %v4657_v15 }
 0x990   :  { %v4222_v60 = vpop.f32.mrb[20].mxu1 }
 0x991   :  { %v1817_v61 = vadd.f32 %v4222_v60, %v1738_v59  ;;  %v1811_v63 = vpop.f32.mrb[21].mxu1 }
 0x992   :  { %v1812_v0 = vadd.f32 %v1811_v63, %v1738_v59 }
 0x993   :  { %v1821_v34 = vmax.f32 %v1817_v61, 0.0 }
 0x994   :  { %v1820_v1 = vmax.f32 %v1812_v0, 0.0 }
 0x996   :  { %4239 = vmatprep.mubr.msk.f32.mxu0 %vm1834_vm7, %v1820_v1 }
 0x997   :  { %4240 = vmatmul.mubr.msk.f32.vlgmr.msra.gmra.mrb[18].mxu0 %vm1834_vm7, %v1821_v34 }
 0x998   :  { %4265 = vmatprep.mubr.msk.f32.mxu0 %vm4658_vm3, %v4657_v15 }
 0xa6a   :  { %v4241_v3 = vpop.f32.mrb[18].mxu0 }
 0xa6b   :  { %v1913_v4 = vadd.f32 %v4241_v3, %v1833_v2  ;;  %v1907_v5 = vpop.f32.mrb[19].mxu0 }
 0xa6c   :  { %v1908_v6 = vadd.f32 %v1907_v5, %v1833_v2 }
 0xa6d   :  { %v1917_v7 = vadd.f32 %v1913_v4, %v1730_v54 }
 0xa6e   :  { %v1916_v8 = vadd.f32 %v1908_v6, %v1729_v52 }
 0xa6f   :  { %v1921_v9 = vsel %vm78_vm0, %v1917_v7, 0.0 }
 0xa70   :  { %1922 = vadd.xlane.f32.xlu0 %v1921_v9  ;;  %v1918_v10 = vsel %vm78_vm0, %v1916_v8, 0.0 }
 0xa71   :  { %1919 = vadd.xlane.f32.xlu1 %v1918_v10 }
 0xafd   :  { %v1923_v11 = vpop.xlane.xlu0 %1922 }
 0xafe   :  { %v1925_v12 = vmul.f32 0.03125, %v1923_v11  ;;  %v1920_v13 = vpop.xlane.xlu1 %1919 }
 0xaff   :  { %v1924_v14 = vmul.f32 0.03125, %v1920_v13 }
 0xb00   :  { %v1927_v22 = vsub.f32 %v1917_v7, %v1925_v12 }
 0xb01   :  { %v1926_v23 = vsub.f32 %v1916_v8, %v1924_v14 }
 0xb02   :  { %v1929_v16 = vmul.f32 %v1927_v22, %v1927_v22 }
 0xb03   :  { %v1928_v17 = vmul.f32 %v1926_v23, %v1926_v23 }
 0xb04   :  { %v1933_v18 = vsel %vm78_vm0, %v1929_v16, 0.0 }
 0xb05   :  { %1934 = vadd.xlane.f32.xlu0 %v1933_v18  ;;  %v1930_v19 = vsel %vm78_vm0, %v1928_v17, 0.0 }
 0xb06   :  { %1931 = vadd.xlane.f32.xlu1 %v1930_v19 }
 0xb92   :  { %v1935_v31 = vpop.xlane.xlu0 %1934 }
 0xb93   :  { %v1937_v32 = vmul.f32 0.03125, %v1935_v31  ;;  %v1932_v33 = vpop.xlane.xlu1 %1931 }
 0xb94   :  { %v1936_v35 = vmul.f32 0.03125, %v1932_v33 }
 0xb95   :  { %v1939_v36 = vadd.f32 1e-05, %v1937_v32 }
 0xb96   :  { %v1938_v37 = vadd.f32 1e-05, %v1936_v35 }
 0xb97   :  { %4532 = vrsqrt.f32 %v1939_v36 }
 0xb98   :  { %4534 = vrsqrt.f32 %v1938_v37 }
 0xba1   :  { %v4533_v42 = vpop.eup %4532 }
 0xba2   :  { %v4535_v45 = vpop.eup %4534  ;;  %v1943_v46 = vmul.f32 %v4533_v42, %v1927_v22 }
 0xba3   :  { %v1942_v47 = vmul.f32 %v4535_v45, %v1926_v23 }
 0xba4   :  { %v1949_v49 = vmul.f32 %v1947_v41, %v1943_v46 }
 0xba5   :  { %v1948_v50 = vmul.f32 %v1947_v41, %v1942_v47 }
 0xba6   :  { %v5071_v52 = vadd.f32 %v1953_v48, %v1949_v49 }
 0xba7   :  { %v5069_v51 = vadd.f32 %v1953_v48, %v1948_v50 }
 0xba9   :  { %4250 = vmatprep.mubr.msk.f32.mxu1 %vm78_vm0, %v5069_v51 }
 0xbaa   :  { %4251 = vmatmul.mubr.msk.f32.vlgmr.msra.gmra.mrb[22].mxu1 %vm78_vm0, %v5071_v52 }
 0xbab   :  { %4255 = vmatprep.mubr.msk.f32.mxu1 %vm4658_vm3, %v4657_v15 }
 0xc7d   :  { %v4252_v54 = vpop.f32.mrb[22].mxu1 }
 0xc7e   :  { %v5084_v55 = vadd.f32 %v4252_v54, %v1966_v26  ;;  %v2039_v56 = vpop.f32.mrb[23].mxu1 }
 0xc7f   :  { %v5086_v57 = vadd.f32 %v2039_v56, %v1966_v26 }
 0xc80   :  { %2052 = vrot.lane.b32.xlu0 %v5084_v55, %s4660_s20 }
 0xc81   :  { %2050 = vrot.lane.b32.xlu1 %v5086_v57, %s4660_s20 }
 0xc84   :  { %2058 = vrot.lane.b32.xlu0 %v5086_v57, %s4661_s21 }
 0xc85   :  { %2054 = vrot.lane.b32.xlu1 %v5086_v57, %s4659_s19 }
 0xc88   :  { %2062 = vrot.lane.b32.xlu0 %v5086_v57, %s4662_s22 }
 0xc89   :  { %2056 = vrot.lane.b32.xlu1 %v5084_v55, %s4659_s19 }
 0xc8d   :  { %2060 = vrot.lane.b32.xlu1 %v5084_v55, %s4661_s21 }
 0xc91   :  { %2138 = vrot.lane.b32.xlu1 %v5084_v55, %s4662_s22 }
 0xcf2   :  { %v5104_v25 = vpop.permute.xlu0 %2052 }
 0xcf3   :  { %2290 = vrot.lane.b32.xlu1 %v5104_v25, %s4662_s22  ;;  %v5108_v59 = vpop.permute.xlu1 %2050 }
 0xcf4   :  { %2214 = vrot.lane.b32.xlu0 %v5108_v59, %s4662_s22 }
 0xcf6   :  { %v5112_v60 = vpop.permute.xlu0 %2058 }
 0xcf7   :  { %v5114_v61 = vpop.permute.xlu1 %2054 }
 0xcf8   :  { %2366 = vrot.lane.b32.xlu0 %v5114_v61, %s4662_s22 }
 0xcfa   :  { %v2063_v63 = vpop.permute.xlu0 %2062 }
 0xcfb   :  { %4254 = vmatpush3.xpose.msk.msra.mxu1 %vm266_vm4, %v2063_v63  ;;  %v5119_v0 = vpop.permute.xlu1 %2056 }
 0xcfc   :  { %2518 = vrot.lane.b32.xlu0 %v5112_v60, %s4662_s22  ;;  %2442 = vrot.lane.b32.xlu1 %v5119_v0, %s4662_s22 }
 0xcfd   :  { %4258 = vmatprep.subr.mxu1 %v4657_v15 }
 0xcfe   :  { %4256 = vmatmul.mubr.msk.f32.vlgmr.msra.gmra.mrb[24].mxu1 %vm266_vm4, %v5086_v57 }
 0xcff   :  { %v5128_v1 = vpop.permute.xlu1 %2060  ;;  %4260 = vmatprep.mubr.msk.f32.mxu1 %vm4658_vm3, %v4657_v15 }
 0xd00   :  { %2594 = vrot.lane.b32.xlu1 %v5128_v1, %s4662_s22 }
 0xd03   :  { %v2139_v34 = vpop.permute.xlu1 %2138 }
 0xd04   :  { %4259 = vmatpush3.xpose.msk.msra.mxu1 %vm266_vm4, %v2139_v34 }
 0xd05   :  { %4268 = vmatprep.subr.mxu1 %v4657_v15 }
 0xd07   :  { %4261 = vmatmul.mubr.msk.f32.vlgmr.msra.gmra.mrb[26].mxu1 %vm266_vm4, %v5084_v55 }
 0xd08   :  { %4270 = vmatprep.mubr.msk.f32.mxu1 %vm4658_vm3, %v4657_v15 }
 0xd65   :  { %v2291_v2 = vpop.permute.xlu1 %2290 }
 0xd66   :  { %v2215_v3 = vpop.permute.xlu0 %2214  ;;  %4269 = vmatpush3.xpose.msk.msra.mxu1 %vm266_vm4, %v2291_v2 }
 0xd67   :  { %4264 = vmatpush3.xpose.msk.msra.mxu0 %vm266_vm4, %v2215_v3  ;;  %4278 = vmatprep.subr.mxu1 %v4657_v15 }
 0xd68   :  { %4273 = vmatprep.subr.mxu0 %v4657_v15 }
 0xd69   :  { %4271 = vmatmul.mubr.msk.f32.vlgmr.msra.gmra.mrb[28].mxu1 %vm266_vm4, %v5104_v25 }
 0xd6a   :  { %4266 = vmatmul.mubr.msk.f32.vlgmr.msra.gmra.mrb[20].mxu0 %vm266_vm4, %v5108_v59  ;;  %v2367_v4 = vpop.permute.xlu0 %2366  ;;  %4280 = vmatprep.mubr.msk.f32.mxu1 %vm4658_vm3, %v4657_v15 }
 0xd6b   :  { %4274 = vmatpush3.xpose.msk.msra.mxu0 %vm266_vm4, %v2367_v4  ;;  %4275 = vmatprep.mubr.msk.f32.mxu0 %vm4658_vm3, %v4657_v15 }
 0xd6c   :  { %4283 = vmatprep.subr.mxu0 %v4657_v15 }
 0xd6e   :  { %4276 = vmatmul.mubr.msk.f32.vlgmr.msra.gmra.mrb[22].mxu0 %vm266_vm4, %v5114_v61  ;;  %v2519_v5 = vpop.permute.xlu0 %2518  ;;  %v2443_v6 = vpop.permute.xlu1 %2442 }
 0xd6f   :  { %4279 = vmatpush3.xpose.msk.msra.mxu1 %vm266_vm4, %v2443_v6  ;;  %4284 = vmatpush3.xpose.msk.msra.mxu0 %vm266_vm4, %v2519_v5 }
 0xd70   :  { %4285 = vmatprep.mubr.msk.f32.mxu0 %vm4658_vm3, %v4657_v15  ;;  %4288 = vmatprep.subr.mxu1 %v4657_v15 }
 0xd71   :  { %4293 = vmatprep.subr.mxu0 %v4657_v15 }
 0xd72   :  { %4281 = vmatmul.mubr.msk.f32.vlgmr.msra.gmra.mrb[30].mxu1 %vm266_vm4, %v5119_v0  ;;  %4286 = vmatmul.mubr.msk.f32.vlgmr.msra.gmra.mrb[24].mxu0 %vm266_vm4, %v5112_v60  ;;  %v2595_v7 = vpop.permute.xlu1 %2594 }
 0xd73   :  { %4289 = vmatpush3.xpose.msk.msra.mxu1 %vm266_vm4, %v2595_v7  ;;  %4290 = vmatprep.mubr.msk.f32.mxu1 %vm4658_vm3, %v4657_v15 }
 0xd74   :  { %4298 = vmatprep.subr.mxu1 %v4657_v15  ;;  %4295 = vmatprep.mubr.msk.f32.mxu0 %vm4658_vm3, %v4657_v15 }
 0xd76   :  { %4291 = vmatmul.mubr.msk.f32.vlgmr.msra.gmra.mrb[32].mxu1 %vm266_vm4, %v5128_v1 }
 0xd77   :  { %4300 = vmatprep.mubr.msk.f32.mxu1 %vm4658_vm3, %v4657_v15 }
 0xdd1   :  { %v2134_v8 = vpop.f32.mrb[24].mxu1 }
 0xdd2   :  { %v4257_v9 = vpop.f32.mrb[25].mxu1  ;;  %v2670_v10 = vsel %vm266_vm4, %v2134_v8, -inf }
 0xdd3   :  { %2671 = vmax.xlane.f32.xlu0 %v2670_v10 }
 0xdda   :  { %v2210_v11 = vpop.f32.mrb[26].mxu1 }
 0xddb   :  { %v4262_v12 = vpop.f32.mrb[27].mxu1  ;;  %v2673_v13 = vsel %vm266_vm4, %v2210_v11, -inf }
 0xddc   :  { %2674 = vmax.xlane.f32.xlu1 %v2673_v13 }
 0xe3c   :  { %v2362_v14 = vpop.f32.mrb[28].mxu1 }
 0xe3d   :  { %v2286_v22 = vpop.f32.mrb[20].mxu0  ;;  %v4272_v23 = vpop.f32.mrb[29].mxu1  ;;  %v2679_v21 = vsel %vm266_vm4, %v2362_v14, -inf }
 0xe3e   :  { %v4267_v16 = vpop.f32.mrb[21].mxu0  ;;  %v2676_v17 = vsel %vm266_vm4, %v2286_v22, -inf }
 0xe3f   :  { %2677 = vmax.xlane.f32.xlu0 %v2676_v17 }
 0xe41   :  { %v2438_v18 = vpop.f32.mrb[22].mxu0 }
 0xe42   :  { %v4277_v19 = vpop.f32.mrb[23].mxu0  ;;  %v2682_v20 = vsel %vm266_vm4, %v2438_v18, -inf }
 0xe43   :  { %2683 = vmax.xlane.f32.xlu1 %v2682_v20  ;;  %2680 = vmax.xlane.f32.xlu0 %v2679_v21 }
 0xe45   :  { %v2514_v27 = vpop.f32.mrb[30].mxu1  ;;  %v2590_v28 = vpop.f32.mrb[24].mxu0 }
 0xe46   :  { %v4282_v29 = vpop.f32.mrb[31].mxu1  ;;  %v4287_v30 = vpop.f32.mrb[25].mxu0  ;;  %v2688_v31 = vsel %vm266_vm4, %v2590_v28, -inf  ;;  %v2685_v32 = vsel %vm266_vm4, %v2514_v27, -inf }
 0xe47   :  { %2689 = vmax.xlane.f32.xlu1 %v2688_v31  ;;  %2686 = vmax.xlane.f32.xlu0 %v2685_v32 }
 0xe49   :  { %v2666_v33 = vpop.f32.mrb[32].mxu1 }
 0xe4a   :  { %v4292_v35 = vpop.f32.mrb[33].mxu1  ;;  %v2691_v36 = vsel %vm266_vm4, %v2666_v33, -inf }
 0xe4b   :  { %2692 = vmax.xlane.f32.xlu0 %v2691_v36 }
 0xe58   :  { %2758 = vrot.lane.b32.xlu1 %v5086_v57, %s4663_s23 }
 0xe5c   :  { %2910 = vrot.lane.b32.xlu1 %v5108_v59, %s4663_s23 }
 0xe60   :  { %2986 = vrot.lane.b32.xlu1 %v5104_v25, %s4663_s23  ;;  %v2672_v42 = vpop.xlane.xlu0 %2671 }
 0xe61   :  { %2834 = vrot.lane.b32.xlu0 %v5084_v55, %s4663_s23  ;;  %v2694_v45 = vsub.f32 %v2134_v8, %v2672_v42 }
 0xe63   :  { %v2702_v47 = vmul.f32 1.442695, %v2694_v45 }
 0xe64   :  { %3138 = vrot.lane.b32.xlu1 %v5119_v0, %s4663_s23 }
 0xe65   :  { %3062 = vrot.lane.b32.xlu0 %v5114_v61, %s4663_s23 }
 0xe69   :  { %v2675_v37 = vpop.xlane.xlu1 %2674 }
 0xe6a   :  { %v2695_v41 = vsub.f32 %v2210_v11, %v2675_v37 }
 0xe6c   :  { %v2704_v46 = vmul.f32 1.442695, %v2695_v41 }
 0xe6e   :  { %4536 = vpow2.f32 %v2704_v46 }
 0xe6f   :  { %4538 = vpow2.f32 %v2702_v47 }
 0xe78   :  { %v5196_v48 = vpop.eup %4536 }
 0xe79   :  { %v2721_v49 = vsel %vm266_vm4, %v5196_v48, 0.0  ;;  %v5200_v50 = vpop.eup %4538 }
 0xe7a   :  { %v2718_v26 = vsel %vm266_vm4, %v5200_v50, 0.0 }
 0xe84   :  { %2722 = vadd.xlane.f32.xlu0 %v2721_v49 }
 0xe88   :  { %2719 = vadd.xlane.f32.xlu1 %v2718_v26 }
 0xecc   :  { %v2678_v54 = vpop.xlane.xlu0 %2677 }
 0xecd   :  { %v2696_v55 = vsub.f32 %v2286_v22, %v2678_v54 }
 0xecf   :  { %v2706_v56 = vmul.f32 1.442695, %v2696_v55 }
 0xed0   :  { %v2681_v57 = vpop.xlane.xlu0 %2680  ;;  %v2684_v25 = vpop.xlane.xlu1 %2683 }
 0xed1   :  { %4540 = vpow2.f32 %v2706_v56  ;;  %v2697_v59 = vsub.f32 %v2362_v14, %v2681_v57  ;;  %v2698_v61 = vsub.f32 %v2438_v18, %v2684_v25 }
 0xed3   :  { %v2708_v63 = vmul.f32 1.442695, %v2697_v59  ;;  %v2710_v0 = vmul.f32 1.442695, %v2698_v61 }
 0xed4   :  { %v2687_v34 = vpop.xlane.xlu0 %2686  ;;  %v2690_v2 = vpop.xlane.xlu1 %2689 }
 0xed5   :  { %4542 = vpow2.f32 %v2708_v63  ;;  %v2699_v3 = vsub.f32 %v2514_v27, %v2687_v34  ;;  %v2700_v4 = vsub.f32 %v2590_v28, %v2690_v2 }
 0xed6   :  { %4544 = vpow2.f32 %v2710_v0 }
 0xed7   :  { %v2712_v5 = vmul.f32 1.442695, %v2699_v3  ;;  %v2714_v6 = vmul.f32 1.442695, %v2700_v4 }
 0xed8   :  { %v2693_v7 = vpop.xlane.xlu0 %2692  ;;  %v2759_v8 = vpop.permute.xlu1 %2758 }
 0xed9   :  { %4546 = vpow2.f32 %v2712_v5  ;;  %v2701_v9 = vsub.f32 %v2666_v33, %v2693_v7  ;;  %4294 = vmatpush3.msra.mxu0 %v2759_v8  ;;  %v3944_v7 = vld [vmem:[%s5378_s3 + $0x28] sm:$0xff] }
 0xeda   :  { %4548 = vpow2.f32 %v2714_v6  ;;  %4303 = vmatprep.subr.mxu0 %v4657_v15  ;;  %v3943_v6 = vld [vmem:[%s5378_s3 + $0x20] sm:$0xff] }
 0xedb   :  { %v4541_v10 = vpop.eup %4540  ;;  %v2716_v11 = vmul.f32 1.442695, %v2701_v9  ;;  %v4441_v8 = vpack.c.bf16 %v3944_v7, %v3943_v6  ;;  %v3945_v9 = vld [vmem:[%s5378_s3 + $0x30] sm:$0xff]  ;;  %v3955_v6 = vld [vmem:[%s5380_s5 + $0x40] sm:$0xff]  ;;  %v3956_v7 = vld [vmem:[%s5380_s5 + $0x48] sm:$0xff] }
 0xedc   :  { %v2835_v12 = vpop.permute.xlu0 %2834  ;;  %v2724_v13 = vsel %vm266_vm4, %v4541_v10, 0.0  ;;  %v2911_v28 = vpop.permute.xlu1 %2910 }
 0xedd   :  { %4550 = vpow2.f32 %v2716_v11  ;;  %2725 = vadd.xlane.f32.xlu1 %v2724_v13  ;;  %4299 = vmatpush3.msra.mxu1 %v2835_v12 }
 0xede   :  { %4308 = vmatprep.subr.mxu1 %v4657_v15 }
 0xedf   :  { %v4543_v14 = vpop.eup %4542 }
 0xee0   :  { %v4545_v22 = vpop.eup %4544  ;;  %v2727_v23 = vsel %vm266_vm4, %v4543_v14, 0.0  ;;  %v2987_v29 = vpop.permute.xlu1 %2986 }
 0xee1   :  { %2728 = vadd.xlane.f32.xlu0 %v2727_v23  ;;  %v2730_v16 = vsel %vm266_vm4, %v4545_v22, 0.0  ;;  %v3063_v30 = vpop.permute.xlu0 %3062 }
 0xee2   :  { %2731 = vadd.xlane.f32.xlu1 %v2730_v16 }
 0xee3   :  { %v4547_v17 = vpop.eup %4546 }
 0xee4   :  { %v4549_v18 = vpop.eup %4548  ;;  %v2733_v19 = vsel %vm266_vm4, %v4547_v17, 0.0  ;;  %v3139_v31 = vpop.permute.xlu1 %3138 }
 0xee5   :  { %2734 = vadd.xlane.f32.xlu0 %v2733_v19  ;;  %v2736_v20 = vsel %vm266_vm4, %v4549_v18, 0.0 }
 0xee6   :  { %2737 = vadd.xlane.f32.xlu1 %v2736_v20 }
 0xee7   :  { %v5211_v21 = vpop.eup %4550 }
 0xee8   :  { %v2739_v27 = vsel %vm266_vm4, %v5211_v21, 0.0 }
 0xee9   :  { %2740 = vadd.xlane.f32.xlu0 %v2739_v27 }
 0xef7   :  { %3290 = vrot.lane.b32.xlu1 %v5128_v1, %s4663_s23 }
 0xeff   :  { %3214 = vrot.lane.b32.xlu0 %v5112_v60, %s4663_s23 }
 0xf11   :  { %v2723_v32 = vpop.xlane.xlu0 %2722 }
 0xf12   :  { %4552 = vrcp.f32 %v2723_v32 }
 0xf15   :  { %v2720_v33 = vpop.xlane.xlu1 %2719 }
 0xf16   :  { %4554 = vrcp.f32 %v2720_v33 }
 0xf1c   :  { %v4553_v35 = vpop.eup %4552 }
 0xf1d   :  { %v2745_v36 = vmul.f32 %v4553_v35, %v5196_v48 }
 0xf1f   :  { %4301 = vmatmul.mubr.msk.f32.vlgmr.msra.gmra.mrb[34].mxu1 %vm266_vm4, %v2745_v36 }
 0xf20   :  { %v4555_v37 = vpop.eup %4554  ;;  %4309 = vmatpush3.msra.mxu1 %v2987_v29  ;;  %4310 = vmatprep.mubr.msk.f32.mxu1 %vm4658_vm3, %v4657_v15 }
 0xf21   :  { %v2743_v60 = vmul.f32 %v4555_v37, %v5200_v50  ;;  %4318 = vmatprep.subr.mxu1 %v4657_v15 }
 0xf23   :  { %4296 = vmatmul.mubr.msk.f32.vlgmr.msra.gmra.mrb[26].mxu0 %vm266_vm4, %v2743_v60 }
 0xf24   :  { %4304 = vmatpush3.msra.mxu0 %v2911_v28  ;;  %4305 = vmatprep.mubr.msk.f32.mxu0 %vm4658_vm3, %v4657_v15 }
 0xf25   :  { %4313 = vmatprep.subr.mxu0 %v4657_v15 }
 0xf6a   :  { %v2726_v1 = vpop.xlane.xlu1 %2725 }
 0xf6b   :  { %4556 = vrcp.f32 %v2726_v1 }
 0xf6e   :  { %v2729_v41 = vpop.xlane.xlu0 %2728 }
 0xf6f   :  { %4558 = vrcp.f32 %v2729_v41  ;;  %v2732_v42 = vpop.xlane.xlu1 %2731 }
 0xf70   :  { %4560 = vrcp.f32 %v2732_v42  ;;  %v3404_v42 = vrot.slane %v5079_v53, %v1607_v62 }
 0xf72   :  { %v2735_v45 = vpop.xlane.xlu0 %2734 }
 0xf73   :  { %4562 = vrcp.f32 %v2735_v45  ;;  %v2738_v46 = vpop.xlane.xlu1 %2737 }
 0xf74   :  { %4564 = vrcp.f32 %v2738_v46 }
 0xf75   :  { %v4557_v47 = vpop.eup %4556 }
 0xf76   :  { %v2747_v48 = vmul.f32 %v4557_v47, %v4541_v10  ;;  %v2741_v49 = vpop.xlane.xlu0 %2740  ;;  %v3946_v10 = vld [vmem:[%s5378_s3 + $0x38] sm:$0xff] }
 0xf77   :  { %4566 = vrcp.f32 %v2741_v49  ;;  %v3291_v63 = vpop.permute.xlu1 %3290  ;;  %v4445_v11 = vpack.c.bf16 %v3946_v10, %v3945_v9  ;;  %v4457_v9 = vpack.c.bf16 %v3956_v7, %v3955_v6  ;;  %v3958_v10 = vld [vmem:[%s5380_s5 + $0x58] sm:$0xff] }
 0xf78   :  { %4306 = vmatmul.mubr.msk.f32.vlgmr.msra.gmra.mrb[28].mxu0 %vm266_vm4, %v2747_v48 }
 0xf79   :  { %v4559_v50 = vpop.eup %4558  ;;  %4314 = vmatpush3.msra.mxu0 %v3063_v30  ;;  %4315 = vmatprep.mubr.msk.f32.mxu0 %vm4658_vm3, %v4657_v15 }
 0xf7a   :  { %v4561_v26 = vpop.eup %4560  ;;  %v2749_v54 = vmul.f32 %v4559_v50, %v4543_v14  ;;  %4323 = vmatprep.subr.mxu0 %v4657_v15  ;;  %v3215_v56 = vpop.permute.xlu0 %3214 }
 0xf7b   :  { %v2751_v55 = vmul.f32 %v4561_v26, %v4545_v22 }
 0xf7c   :  { %4311 = vmatmul.mubr.msk.f32.vlgmr.msra.gmra.mrb[36].mxu1 %vm266_vm4, %v2749_v54 }
 0xf7d   :  { %v4563_v57 = vpop.eup %4562  ;;  %4316 = vmatmul.mubr.msk.f32.vlgmr.msra.gmra.mrb[30].mxu0 %vm266_vm4, %v2751_v55  ;;  %4319 = vmatpush3.msra.mxu1 %v3139_v31 }
 0xf7e   :  { %v4565_v25 = vpop.eup %4564  ;;  %v2753_v59 = vmul.f32 %v4563_v57, %v4547_v17  ;;  %4324 = vmatpush3.msra.mxu0 %v3215_v56  ;;  %4320 = vmatprep.mubr.msk.f32.mxu1 %vm4658_vm3, %v4657_v15 }
 0xf7f   :  { %v2755_v61 = vmul.f32 %v4565_v25, %v4549_v18  ;;  %4325 = vmatprep.mubr.msk.f32.mxu0 %vm4658_vm3, %v4657_v15  ;;  %4328 = vmatprep.subr.mxu1 %v4657_v15 }
 0xf80   :  { %4321 = vmatmul.mubr.msk.f32.vlgmr.msra.gmra.mrb[38].mxu1 %vm266_vm4, %v2753_v59  ;;  %4442 = vmatprep.subr.bf16.mxu0 %v4441_v8 }
 0xf81   :  { %v4567_v0 = vpop.eup %4566  ;;  %4326 = vmatmul.mubr.msk.f32.vlgmr.msra.gmra.mrb[32].mxu0 %vm266_vm4, %v2755_v61  ;;  %4329 = vmatpush3.msra.mxu1 %v3291_v63 }
 0xf82   :  { %v2757_v34 = vmul.f32 %v4567_v0, %v5211_v21  ;;  %4330 = vmatprep.mubr.msk.f32.mxu1 %vm4658_vm3, %v4657_v15  ;;  %4444 = vmatpush3.bf16.msra.mxu0 %v4441_v8  ;;  %v3957_v8 = vld [vmem:[%s5380_s5 + $0x50] sm:$0xff] }
 0xf83   :  { %4446 = vmatprep.subr.bf16.mxu0 %v4445_v11 }
 0xf84   :  { %4331 = vmatmul.mubr.msk.f32.vlgmr.msra.gmra.mrb[40].mxu1 %vm266_vm4, %v2757_v34  ;;  %v3950_v34 = vld [vmem:[%s5379_s4 + $0x28] sm:$0xff] }
 0xf86   :  { %4448 = vmatpush3.bf16.msra.mxu0 %v4445_v11  ;;  %v4461_v11 = vpack.c.bf16 %v3958_v10, %v3957_v8 }
 0xf87   :  { %4458 = vmatprep.subr.bf16.mxu0 %v4457_v9 }
 0xff2   :  { %v2906_v2 = vpop.f32.mrb[34].mxu1 }
 0xff3   :  { %v4302_v3 = vpop.f32.mrb[35].mxu1 }
 0xff4   :  { %v3951_v3 = vld [vmem:[%s5379_s4 + $0x30] sm:$0xff] }
 0xff6   :  { %v2830_v4 = vpop.f32.mrb[26].mxu0 }
 0xff7   :  { %v4297_v5 = vpop.f32.mrb[27].mxu0 }
0x104b   :  { %v2982_v12 = vpop.f32.mrb[28].mxu0 }
0x104c   :  { %3368 = vrot.lane.b32.xlu0 %v2982_v12, %s4654_s16  ;;  %v4307_v13 = vpop.f32.mrb[29].mxu0  ;;  %v3959_v12 = vld [vmem:[%s5380_s5 + $0x60] sm:$0xff] }
0x104d   :  { %v3960_v13 = vld [vmem:[%s5380_s5 + $0x68] sm:$0xff] }
0x104f   :  { %v3058_v14 = vpop.f32.mrb[36].mxu1 }
0x1050   :  { %v3134_v22 = vpop.f32.mrb[30].mxu0  ;;  %3370 = vrot.lane.b32.xlu1 %v3058_v14, %s4654_s16  ;;  %v4312_v23 = vpop.f32.mrb[37].mxu1  ;;  %v4465_v14 = vpack.c.bf16 %v3960_v13, %v3959_v12  ;;  %v3743_v13 = vrot.slane %v5079_v53, %v1946_v39 }
0x1051   :  { %3376 = vrot.lane.b32.xlu0 %v3134_v22, %s4664_s9  ;;  %v4317_v16 = vpop.f32.mrb[31].mxu0 }
0x1053   :  { %v3210_v17 = vpop.f32.mrb[38].mxu1 }
0x1054   :  { %v3286_v18 = vpop.f32.mrb[32].mxu0  ;;  %3378 = vrot.lane.b32.xlu1 %v3210_v17, %s4664_s9  ;;  %v4322_v19 = vpop.f32.mrb[39].mxu1 }
0x1055   :  { %3384 = vrot.lane.b32.xlu0 %v3286_v18, %s4665_s10  ;;  %v4327_v20 = vpop.f32.mrb[33].mxu0 }
0x1056   :  { %v3517_v20 = vrot.slane %v5079_v53, %v1721_v43  ;;  %v3961_v43 = vld [vmem:[%s5380_s5 + $0x70] sm:$0xff] }
0x1057   :  { %v3362_v21 = vpop.f32.mrb[40].mxu1 }
0x1058   :  { %3386 = vrot.lane.b32.xlu1 %v3362_v21, %s4665_s10  ;;  %v4332_v27 = vpop.f32.mrb[41].mxu1 }
0x10be   :  { %v3369_v28 = vpop.permute.xlu0 %3368 }
0x10bf   :  { %v3390_v31 = vsel %vm266_vm4, %v2830_v4, %v3369_v28  ;;  %v3952_v4 = vld [vmem:[%s5379_s4 + $0x38] sm:$0xff]  ;;  %v3523_v28 = vrot.slane %v5079_v53, %v1727_v44 }
0x10c0   :  { %v4453_v5 = vpack.c.bf16 %v3952_v4, %v3951_v3  ;;  %v3962_v44 = vld [vmem:[%s5380_s5 + $0x78] sm:$0xff]  ;;  %v4666_v3 = vmov 0.0|0.0  }
0x10c2   :  { %v3371_v29 = vpop.permute.xlu1 %3370 }
0x10c3   :  { %v3377_v30 = vpop.permute.xlu0 %3376  ;;  %v3391_v37 = vsel %vm266_vm4, %v2906_v2, %v3371_v29 }
0x10c4   :  { %v3392_v33 = vsel %vm1595_vm5, %v3390_v31, %v3377_v30 }
0x10c6   :  { %v3379_v32 = vpop.permute.xlu1 %3378 }
0x10c7   :  { %v3385_v35 = vpop.permute.xlu0 %3384  ;;  %v3393_v60 = vsel %vm1595_vm5, %v3391_v37, %v3379_v32  ;;  %v3534_v37 = vrot.slane %v5079_v53, %v1737_v58 }
0x10c8   :  { %v3394_v36 = vsel %vm1598_vm6, %v3392_v33, %v3385_v35 }
0x10c9   :  { %4341 = vmatprep.mubr.msk.f32.mxu0 %vm78_vm0, %v3394_v36  ;;  %v4469_v36 = vpack.c.bf16 %v3962_v44, %v3961_v43 }
0x10ca   :  { %v3387_v1 = vpop.permute.xlu1 %3386 }
0x10cb   :  { %v3395_v41 = vsel %vm1598_vm6, %v3393_v60, %v3387_v1 }
0x10cc   :  { %4342 = vmatmul.mubr.msk.f32.vlgmr.msra.gmra.mrb[34].mxu0 %vm78_vm0, %v3395_v41 }
0x10cd   :  { %4460 = vmatpush3.bf16.msra.mxu0 %v4457_v9 }
0x10ce   :  { %4462 = vmatprep.subr.bf16.mxu0 %v4461_v11 }
0x10d1   :  { %4464 = vmatpush3.bf16.msra.mxu0 %v4461_v11 }
0x10d2   :  { %4466 = vmatprep.subr.bf16.mxu0 %v4465_v14 }
0x10d5   :  { %4468 = vmatpush3.bf16.msra.mxu0 %v4465_v14 }
0x10d6   :  { %4470 = vmatprep.subr.bf16.mxu0 %v4469_v36 }
0x10d9   :  { %4472 = vmatpush3.bf16.msra.mxu0 %v4469_v36 }
0x119f   :  { %v4343_v45 = vpop.f32.mrb[34].mxu0 }
0x11a0   :  { %v3483_v46 = vadd.f32 %v4343_v45, %v3404_v42  ;;  %v3477_v47 = vpop.f32.mrb[35].mxu0 }
0x11a1   :  { %v3478_v48 = vadd.f32 %v3477_v47, %v3404_v42 }
0x11a2   :  { %v3487_v49 = vadd.f32 %v3483_v46, %v5071_v52  ;;  %v3630_v46 = vrot.slane %v5079_v53, %v1832_v38 }
0x11a3   :  { %v3486_v50 = vadd.f32 %v3478_v48, %v5069_v51  ;;  %v3949_v51 = vld [vmem:[%s5379_s4 + $0x20] sm:$0xff] }
0x11a4   :  { %v3491_v26 = vsel %vm78_vm0, %v3487_v49, 0.0  ;;  %v4449_v2 = vpack.c.bf16 %v3950_v34, %v3949_v51  ;;  %v3769_v51 = vld [vmem:[%s5382_s7] sm:$0xff]  ;;  %v3770_v34 = vld [vmem:[%s5382_s7 + $0x8] sm:$0xff] }
0x11a5   :  { %3492 = vadd.xlane.f32.xlu1 %v3491_v26  ;;  %v3488_v54 = vsel %vm78_vm0, %v3486_v50, 0.0  ;;  %v4474_v4 = vpack.c.bf16 %v3770_v34, %v3769_v51 }
0x11a6   :  { %3489 = vadd.xlane.f32.xlu0 %v3488_v54  ;;  %4450 = vmatprep.subr.bf16.mxu1 %v4449_v2 }
0x11a7   :  { %4452 = vmatpush3.bf16.msra.mxu1 %v4449_v2  ;;  %v3771_v2 = vld [vmem:[%s5382_s7 + $0x10] sm:$0xff] }
0x11a8   :  { %4454 = vmatprep.subr.bf16.mxu1 %v4453_v5 }
0x11ab   :  { %4456 = vmatpush3.bf16.msra.mxu1 %v4453_v5  ;;  %v3772_v5 = vld [vmem:[%s5382_s7 + $0x18] sm:$0xff] }
0x11ac   :  { %4473 = vmatprep.subr.bf16.mxu1 %v4666_v3  ;;  %v4477_v6 = vpack.c.bf16 %v3772_v5, %v3771_v2 }
0x1232   :  { %v3493_v55 = vpop.xlane.xlu1 %3492 }
0x1233   :  { %v3495_v56 = vmul.f32 0.03125, %v3493_v55  ;;  %v3490_v57 = vpop.xlane.xlu0 %3489 }
0x1234   :  { %v3494_v25 = vmul.f32 0.03125, %v3490_v57 }
0x1235   :  { %v3497_v59 = vsub.f32 %v3487_v49, %v3495_v56 }
0x1236   :  { %v3496_v62 = vsub.f32 %v3486_v50, %v3494_v25 }
0x1237   :  { %v3499_v0 = vmul.f32 %v3497_v59, %v3497_v59 }
0x1238   :  { %v3498_v61 = vmul.f32 %v3496_v62, %v3496_v62 }
0x1239   :  { %v3503_v52 = vsel %vm78_vm0, %v3499_v0, 0.0 }
0x123a   :  { %v3500_v63 = vsel %vm78_vm0, %v3498_v61, 0.0 }
0x123b   :  { %3501 = vadd.xlane.f32.xlu0 %v3500_v63 }
0x123f   :  { %3504 = vadd.xlane.f32.xlu0 %v3503_v52 }
0x12c8   :  { %v3502_v22 = vpop.xlane.xlu0 %3501 }
0x12c9   :  { %v3506_v23 = vmul.f32 0.03125, %v3502_v22 }
0x12cb   :  { %v3508_v16 = vadd.f32 1e-05, %v3506_v23  ;;  %v3749_v23 = vrot.slane %v5079_v53, %v1952_v40 }
0x12cc   :  { %v3505_v17 = vpop.xlane.xlu0 %3504 }
0x12cd   :  { %4568 = vrsqrt.f32 %v3508_v16  ;;  %v3507_v18 = vmul.f32 0.03125, %v3505_v17 }
0x12cf   :  { %v3509_v19 = vadd.f32 1e-05, %v3507_v18 }
0x12d1   :  { %4570 = vrsqrt.f32 %v3509_v19 }
0x12d7   :  { %v4569_v21 = vpop.eup %4568 }
0x12d8   :  { %v3512_v27 = vmul.f32 %v4569_v21, %v3496_v62 }
0x12da   :  { %v3518_v29 = vmul.f32 %v3517_v20, %v3512_v27 }
0x12db   :  { %v4571_v30 = vpop.eup %4570 }
0x12dc   :  { %v3513_v31 = vmul.f32 %v4571_v30, %v3497_v59  ;;  %v3524_v32 = vadd.f32 %v3523_v28, %v3518_v29 }
0x12de   :  { %v3519_v33 = vmul.f32 %v3517_v20, %v3513_v31  ;;  %4352 = vmatprep.mubr.msk.f32.mxu1 %vm78_vm0, %v3524_v32 }
0x12e0   :  { %v3525_v35 = vadd.f32 %v3523_v28, %v3519_v33 }
0x12e2   :  { %4353 = vmatmul.mubr.msk.f32.vlgmr.msra.gmra.mrb[42].mxu1 %vm78_vm0, %v3525_v35 }
0x12e3   :  { %4382 = vmatprep.mubr.msk.f32.mxu1 %vm4658_vm3, %v4657_v15  ;;  %4475 = vmatpush3.bf16.msra.mxu1 %v4474_v4 }
0x12e4   :  { %4476 = vmatprep.subr.bf16.mxu1 %v4666_v3 }
0x12e7   :  { %4478 = vmatpush3.bf16.msra.mxu1 %v4477_v6 }
0x13b5   :  { %v4354_v60 = vpop.f32.mrb[42].mxu1 }
0x13b6   :  { %v3613_v1 = vadd.f32 %v4354_v60, %v3534_v37  ;;  %v3607_v41 = vpop.f32.mrb[43].mxu1 }
0x13b7   :  { %v3608_v42 = vadd.f32 %v3607_v41, %v3534_v37 }
0x13b8   :  { %v3617_v45 = vmax.f32 %v3613_v1, 0.0  ;;  %v3965_v1 = vld [vmem:[%s5382_s7 + $0x20] ss:$0 sm:$0xff] }
0x13b9   :  { %v3616_v15 = vmax.f32 %v3608_v42, 0.0 }
0x13bb   :  { %4371 = vmatprep.mubr.msk.f32.mxu0 %vm1834_vm7, %v3616_v15 }
0x13bc   :  { %4372 = vmatmul.mubr.msk.f32.vlgmr.msra.gmra.mrb[36].mxu0 %vm1834_vm7, %v3617_v45 }
0x148f   :  { %v4373_v47 = vpop.f32.mrb[36].mxu0 }
0x1490   :  { %v3709_v48 = vadd.f32 %v4373_v47, %v3630_v46  ;;  %v3703_v49 = vpop.f32.mrb[37].mxu0 }
0x1491   :  { %v3704_v50 = vadd.f32 %v3703_v49, %v3630_v46 }
0x1492   :  { %v3713_v26 = vadd.f32 %v3709_v48, %v3525_v35 }
0x1493   :  { %v3712_v58 = vadd.f32 %v3704_v50, %v3524_v32 }
0x1494   :  { %v3717_v54 = vsel %vm78_vm0, %v3713_v26, 0.0 }
0x1495   :  { %3718 = vadd.xlane.f32.xlu0 %v3717_v54  ;;  %v3714_v55 = vsel %vm78_vm0, %v3712_v58, 0.0 }
0x1496   :  { %3715 = vadd.xlane.f32.xlu1 %v3714_v55 }
0x1522   :  { %v3719_v56 = vpop.xlane.xlu0 %3718 }
0x1523   :  { %v3721_v57 = vmul.f32 0.03125, %v3719_v56  ;;  %v3716_v25 = vpop.xlane.xlu1 %3715 }
0x1524   :  { %v3720_v59 = vmul.f32 0.03125, %v3716_v25 }
0x1525   :  { %v3723_v62 = vsub.f32 %v3713_v26, %v3721_v57 }
0x1526   :  { %v3722_v61 = vsub.f32 %v3712_v58, %v3720_v59 }
0x1527   :  { %v3725_v63 = vmul.f32 %v3723_v62, %v3723_v62 }
0x1528   :  { %v3724_v38 = vmul.f32 %v3722_v61, %v3722_v61 }
0x1529   :  { %v3729_v0 = vsel %vm78_vm0, %v3725_v63, 0.0 }
0x152a   :  { %3730 = vadd.xlane.f32.xlu0 %v3729_v0  ;;  %v3726_v52 = vsel %vm78_vm0, %v3724_v38, 0.0 }
0x152b   :  { %3727 = vadd.xlane.f32.xlu1 %v3726_v52 }
0x15b7   :  { %v3731_v7 = vpop.xlane.xlu0 %3730 }
0x15b8   :  { %v3733_v8 = vmul.f32 0.03125, %v3731_v7  ;;  %v3728_v9 = vpop.xlane.xlu1 %3727 }
0x15b9   :  { %v3732_v10 = vmul.f32 0.03125, %v3728_v9 }
0x15ba   :  { %v3735_v11 = vadd.f32 1e-05, %v3733_v8 }
0x15bb   :  { %v3734_v12 = vadd.f32 1e-05, %v3732_v10 }
0x15bc   :  { %4572 = vrsqrt.f32 %v3735_v11 }
0x15bd   :  { %4574 = vrsqrt.f32 %v3734_v12 }
0x15c6   :  { %v4573_v14 = vpop.eup %4572 }
0x15c7   :  { %v4575_v22 = vpop.eup %4574  ;;  %v3739_v16 = vmul.f32 %v4573_v14, %v3723_v62 }
0x15c8   :  { %v3738_v17 = vmul.f32 %v4575_v22, %v3722_v61 }
0x15c9   :  { %v3745_v18 = vmul.f32 %v3743_v13, %v3739_v16 }
0x15ca   :  { %v3744_v19 = vmul.f32 %v3743_v13, %v3738_v17 }
0x15cb   :  { %v3751_v20 = vadd.f32 %v3749_v23, %v3745_v18 }
0x15cc   :  { %v3750_v21 = vadd.f32 %v3749_v23, %v3744_v19 }
0x15cd   :  { %v3759_v27 = vsel %vm78_vm0, %v3751_v20, 0.0 }
0x15ce   :  { %v3752_v28 = vsel %vm78_vm0, %v3750_v21, 0.0  ;;  %v3760_v29 = vrot.slane %v3759_v27, 4 }
0x15cf   :  { %v3753_v30 = vrot.slane %v3752_v28, 4 }
0x15d0   :  { %v3761_v31 = vadd.f32 %v3760_v29, %v3759_v27 }
0x15d1   :  { %v3754_v39 = vadd.f32 %v3753_v30, %v3752_v28 }
0x15d2   :  { %v3762_v32 = vrot.slane %v3761_v31, 2 }
0x15d3   :  { %v3755_v33 = vrot.slane %v3754_v39, 2 }
0x15d4   :  { %v3763_v35 = vadd.f32 %v3762_v32, %v3761_v31 }
0x15d5   :  { %v3756_v24 = vadd.f32 %v3755_v33, %v3754_v39 }
0x15d6   :  { %v3764_v43 = vrot.slane %v3763_v35, 1 }
0x15d7   :  { %v3757_v40 = vrot.slane %v3756_v24, 1 }
0x15d8   :  { %v3765_v53 = vadd.f32 %v3764_v43, %v3763_v35 }
0x15d9   :  { %v3758_v44 = vadd.f32 %v3757_v40, %v3756_v24 }
0x15da   :  { %v3768_v36 = vmul.f32 0.125, %v3765_v53 }
0x15db   :  { %v3767_v37 = vmul.f32 0.125, %v3758_v44 }
0x15dd   :  { %v3781_v60 = vsel %vm3780_vm8, %v3768_v36, %v3767_v37 }
0x15de   :  { %4383 = vmatmul.mubr.msk.f32.vlgmr.msra.gmra.mrb[44].mxu1 %vm78_vm0, %v3781_v60 }
0x16b1   :  { %v3850_v41 = vpop.f32.mrb[44].mxu1 }
0x16b2   :  { %v3851_v42 = vadd.f32 %v3965_v1, %v3850_v41  ;;  %v4384_v15 = vpop.f32.mrb[45].mxu1 }
0x16b4   :  { %v3967_v45 = vmul.f32 -1.442695, %v3851_v42 }
0x16b6   :  { %4576 = vpow2.f32 %v3967_v45 }
0x16c0   :  { %v4577_v46 = vpop.eup %4576 }
0x16c1   :  { %v3857_v47 = vadd.f32 1.0, %v4577_v46 }
0x16c3   :  { %4578 = vrcp.f32 %v3857_v47 }
0x16cd   :  { %v4579_v48 = vpop.eup %4578 }
0x16ce   :  { %3860 = vst [vmem:[#allocation7] sm:$0x3] %v4579_v48 }
0x16cf   :  { %4635 = shalt.err (!%p4632_p6)
}
0x16d0   :  { %s4636_s15 = scalar_lea.hbm %s5383_s8, 32 }
0x16d1   :  { %p4637_p7 = scmp.ne.s32.totalorder %s5383_s8, %s4636_s15  ;;  %p4640_p8 = scmp.lt.u32.totalorder %s4636_s15, %s5383_s8 }
0x16d3   :  { %p4642_p9 = pnand %p4640_p8, %p4637_p7 }
0x16d5   :  { %4645 = shalt.err (!%p4642_p9)
}
0x16d6   :  { %3870 = dma.vmem_to_hbm [thread:$0]  %s3868_s12, 32, %s5383_s8, [#allocation4]  }
0x16d7   :  { %4650 = dma.done.wait [#allocation4], 32  }
0x16d8   :  { %4651 = vsyncadd [#allocation4], 4294967264 }
0x16d9   :  { %3874 = vsyncpa [#allocation3], 1 }
0x16da   :  { %3875 = vsyncpa [#allocation6], 1 }
0x16db   :  { %3876 = vsyncpa [#allocation4], 1 }

</bundles_post_ra>
